<compile_context>
chip_gen: v7x
topology: tpu7x:2x2x1
jax: 0.10.0
libtpu: 0.0.40
codegen_flags: <defaults>
</compile_context>

<pallas_src>
import functools

import numpy as np

import jax
import jax.numpy as jnp
from jax.experimental import pallas as pl
from jax.experimental.pallas import tpu as pltpu


def rnn_lstm_kernel(x_ref, *refs, num_layers, seq_len, block_batch, hidden_size,
                    compute_dtype):
    """Whole LSTM stack + fused final FC for one batch tile.

    refs = [w_ih_0, w_hh_0, b_0, ..., w_ih_{L-1}, w_hh_{L-1}, b_{L-1}, fc_w, fc_b,
            out_ref, gx_slab, fc_slab, *hidden_slabs]
    x_ref is the batch tile, time-major inside the tile: (T*B_blk, input_size).
    """
    T, bB, H = seq_len, block_batch, hidden_size
    cdt = compute_dtype
    n_params = 3 * num_layers + 2
    param_refs = refs[:n_params]
    out_ref = refs[n_params]
    gx_ref = refs[n_params + 1]        # (T*bB, 4H) f32: staged gate pre-activations
    fc_slab = refs[n_params + 2]       # (bB, T*H)  cdt: FC-layout hidden sequence
    hid_slabs = refs[n_params + 3:]    # ping-pong (T*bB, H) cdt slabs, layers 0..L-2

    fc_w_ref = param_refs[3 * num_layers]       # (T*H, C_pad)
    fc_b_ref = param_refs[3 * num_layers + 1]   # (1, C_pad) f32

    for l in range(num_layers):
        w_ih = param_refs[3 * l][...]       # (in_dim, 4H) cdt
        w_hh = param_refs[3 * l + 1][...]   # (H, 4H)      cdt
        b = param_refs[3 * l + 2][...]      # (1, 4H)      f32
        last_layer = (l == num_layers - 1)

        x_in = x_ref[...] if l == 0 else hid_slabs[(l - 1) % 2][...]
        # Hoisted input projection: ONE (T*bB, in_dim) @ (in_dim, 4H) matmul + bias,
        # staged into VMEM so the serial t-loop only does cheap aligned loads.
        gx_ref[...] = jnp.dot(x_in, w_ih, preferred_element_type=jnp.float32) + b

        h = jnp.zeros((bB, H), jnp.float32)   # h0 = 0 (matches torch.zeros in forward)
        c = jnp.zeros((bB, H), jnp.float32)   # c0 = 0
        # TODO(synk): keep W_hh staged in the MXU across the whole t-loop via
        #   pltpu.matmul_push_rhs / matmul_acc_lhs / matmul_pop once H is a multiple
        #   of the native MXU tile (128/256); at H=32 the non-native RHS shape is not
        #   worth the lowering risk and the matmul is a single push anyway.
        # TODO(synk): for seq_len >~ 16 switch to lax.fori_loop with (h, c) carried
        #   state and pl.ds(t*bB, bB) / pl.multiple_of slab indexing (static unroll
        #   does not bound live ranges).
        for t in range(seq_len):
            # Single recurrent matmul per step (W_ih contribution already hoisted).
            g = gx_ref[t * bB:(t + 1) * bB, :] + jnp.dot(
                h.astype(cdt), w_hh, preferred_element_type=jnp.float32)  # (bB, 4H) f32
            # TODO(synk): for production configs make H a multiple of 128 so these
            #   gate slices and the slab stores below are full-vreg / lane-dense;
            #   at the demo's H=32 they are sub-128-lane selects.
            i_g = jax.nn.sigmoid(g[:, 0 * H:1 * H])
            f_g = jax.nn.sigmoid(g[:, 1 * H:2 * H])
            g_g = jnp.tanh(g[:, 2 * H:3 * H])
            o_g = jax.nn.sigmoid(g[:, 3 * H:4 * H])
            c = f_g * c + i_g * g_g
            h = o_g * jnp.tanh(c)
            if last_layer:
                # FC-layout store: column block t*H:(t+1)*H of the (bB, T*H) slab so
                # the classifier below is one K=T*H matmul instead of T small ones.
                fc_slab[:, t * H:(t + 1) * H] = h.astype(cdt)
            else:
                # Time-major, sublane-aligned store feeding the next layer's hoisted
                # projection with no relayout.
                hid_slabs[l % 2][t * bB:(t + 1) * bB, :] = h.astype(cdt)

    # Fused final FC: single (bB, T*H) @ (T*H, C_pad) matmul, 128-lane-dense store.
    out_ref[...] = (
        jnp.dot(fc_slab[...], fc_w_ref[...], preferred_element_type=jnp.float32)
        + fc_b_ref[...]
    ).astype(out_ref.dtype)


def rnn_lstm_forward(x, params, *, num_layers, seq_len, num_classes, hidden_size,
                     compute_dtype=jnp.float32):
    B, T, I = x.shape
    assert T == seq_len
    H = hidden_size
    cdt = np.dtype(compute_dtype)
    sub = 16 if cdt == np.dtype(jnp.bfloat16) else 8   # sublane tile of compute dtype

    # Batch tiling: pad to the sublane tile and split into up to two tiles so v7x's
    # two TensorCores each take one (the recurrence is batch-parallel).
    B_pad = max(sub, ((B + sub - 1) // sub) * sub)
    if B_pad >= 2 * sub:
        n_bt = 2
        B_BLK = ((B_pad // 2 + sub - 1) // sub) * sub
        B_pad = n_bt * B_BLK
    else:
        n_bt = 1
        B_BLK = B_pad

    C_pad = max(128, ((num_classes + 127) // 128) * 128)   # lane-dense output store

    # Wrapper-side layout plumbing only: pad batch, go block-batch-major with
    # time-major rows inside each block -> (n_bt, T*B_BLK, I).
    x_p = jnp.zeros((B_pad, T, I), cdt).at[:B].set(x.astype(cdt))
    x_blk = (x_p.reshape(n_bt, B_BLK, T, I)
                 .transpose(0, 2, 1, 3)
                 .reshape(n_bt, T * B_BLK, I))

    flat_params = []
    for l in range(num_layers):
        flat_params += [params[f"w_ih_{l}"].astype(cdt),
                        params[f"w_hh_{l}"].astype(cdt),
                        params[f"b_{l}"].astype(jnp.float32)]
    fc_w = params["fc_w"]   # (T*H, C)
    fc_b = params["fc_b"]   # (1, C)
    fc_w_p = jnp.zeros((fc_w.shape[0], C_pad), cdt).at[:, :num_classes].set(fc_w.astype(cdt))
    fc_b_p = jnp.zeros((1, C_pad), jnp.float32).at[:, :num_classes].set(fc_b.astype(jnp.float32))
    flat_params += [fc_w_p, fc_b_p]

    x_spec = pl.BlockSpec((None, T * B_BLK, I), lambda bt: (bt, 0, 0))
    w_specs = [pl.BlockSpec(p.shape, lambda bt: (0, 0)) for p in flat_params]
    out_spec = pl.BlockSpec((B_BLK, C_pad), lambda bt: (bt, 0))

    n_hid = min(2, max(num_layers - 1, 0))
    scratch = [pltpu.VMEM((T * B_BLK, 4 * H), jnp.float32),   # staged gate pre-acts
               pltpu.VMEM((B_BLK, T * H), cdt)]               # FC-layout hidden slab
    scratch += [pltpu.VMEM((T * B_BLK, H), cdt) for _ in range(n_hid)]

    # Explicit VMEM budget sized from the actual footprint (v5e scoped default is
    # only 16 MiB); x2 accounts for Pallas double-buffering of blocked operands.
    in_out_bytes = (T * B_BLK * I * cdt.itemsize
                    + sum(int(p.size) * p.dtype.itemsize for p in flat_params)
                    + B_BLK * C_pad * 4)
    scratch_bytes = (T * B_BLK * 4 * H * 4
                     + B_BLK * T * H * cdt.itemsize
                     + n_hid * T * B_BLK * H * cdt.itemsize)
    vmem_limit = int(max(2 * in_out_bytes + scratch_bytes + (4 << 20), 16 << 20))

    # TODO(synk): for scaled configs (H >= ~512, several layers) stream per-layer
    #   weights via memory_space=pl.ANY + pltpu.make_async_copy double-buffering
    #   (prefetch layer l+1 during layer l's t-loop) instead of keeping every layer
    #   VMEM-resident -- v7x has only 64 MiB physical VMEM -- and chunk the hoisted
    #   projection over T.
    kernel = functools.partial(
        rnn_lstm_kernel,
        num_layers=num_layers,
        seq_len=seq_len,
        block_batch=B_BLK,
        hidden_size=H,
        compute_dtype=cdt,
    )
    out_p = pl.pallas_call(
        kernel,
        out_shape=jax.ShapeDtypeStruct((B_pad, C_pad), jnp.float32),
        grid_spec=pltpu.PrefetchScalarGridSpec(
            num_scalar_prefetch=0,
            grid=(n_bt,),
            in_specs=[x_spec] + w_specs,
            out_specs=out_spec,
            scratch_shapes=scratch,
        ),
        compiler_params=pltpu.CompilerParams(
            dimension_semantics=("parallel",),
            vmem_limit_bytes=vmem_limit,
        ),
    )(x_blk, *flat_params)
    return out_p[:B, :num_classes]


def init_params(key, *, input_size, hidden_size, num_layers, num_classes, seq_len):
    """Deterministic init mirroring PyTorch's uniform(-1/sqrt(H), 1/sqrt(H)) scheme."""
    params = {}
    k_lstm = 1.0 / jnp.sqrt(hidden_size)
    for l in range(num_layers):
        in_dim = input_size if l == 0 else hidden_size
        key, k1, k2, k3, k4 = jax.random.split(key, 5)
        w_ih = jax.random.uniform(k1, (4 * hidden_size, in_dim), jnp.float32, -k_lstm, k_lstm)
        w_hh = jax.random.uniform(k2, (4 * hidden_size, hidden_size), jnp.float32, -k_lstm, k_lstm)
        b_ih = jax.random.uniform(k3, (4 * hidden_size,), jnp.float32, -k_lstm, k_lstm)
        b_hh = jax.random.uniform(k4, (4 * hidden_size,), jnp.float32, -k_lstm, k_lstm)
        params[f"w_ih_{l}"] = w_ih.T                       # (in_dim, 4H)
        params[f"w_hh_{l}"] = w_hh.T                       # (H, 4H)
        params[f"b_{l}"] = (b_ih + b_hh)[None, :]          # (1, 4H)
    fc_in = hidden_size * seq_len
    k_fc = 1.0 / jnp.sqrt(fc_in)
    key, k1, k2 = jax.random.split(key, 3)
    fc_w = jax.random.uniform(k1, (num_classes, fc_in), jnp.float32, -k_fc, k_fc)
    fc_b = jax.random.uniform(k2, (num_classes,), jnp.float32, -k_fc, k_fc)
    params["fc_w"] = fc_w.T            # (T*H, C)
    params["fc_b"] = fc_b[None, :]     # (1, C)
    return params


def reference_forward(x, params, *, num_layers, seq_len):
    """Pure-JAX f32 reference of the PyTorch forward (unpadded, naive layout)."""
    B = x.shape[0]
    H = params["w_hh_0"].shape[0]
    seq = [x[:, t, :] for t in range(seq_len)]
    for l in range(num_layers):
        w_ih, w_hh, b = params[f"w_ih_{l}"], params[f"w_hh_{l}"], params[f"b_{l}"]
        h = jnp.zeros((B, H), jnp.float32)
        c = jnp.zeros((B, H), jnp.float32)
        new_seq = []
        for t in range(seq_len):
            g = seq[t] @ w_ih + h @ w_hh + b
            i_g = jax.nn.sigmoid(g[:, 0 * H:1 * H])
            f_g = jax.nn.sigmoid(g[:, 1 * H:2 * H])
            g_g = jnp.tanh(g[:, 2 * H:3 * H])
            o_g = jax.nn.sigmoid(g[:, 3 * H:4 * H])
            c = f_g * c + i_g * g_g
            h = o_g * jnp.tanh(c)
            new_seq.append(h)
        seq = new_seq
    flat = jnp.concatenate(seq, axis=-1)
    return flat @ params["fc_w"] + params["fc_b"]


if __name__ == "__main__":
    # Small, module-consistent shapes.
    batch = 2
    seq_len = 8
    input_size = 32
    hidden_size = 32
    num_layers = 2
    num_classes = 10

    key = jax.random.PRNGKey(0)
    key, kx = jax.random.split(key)
    x = jax.random.normal(kx, (batch, seq_len, input_size), jnp.float32)

    params = init_params(
        key,
        input_size=input_size,
        hidden_size=hidden_size,
        num_layers=num_layers,
        num_classes=num_classes,
        seq_len=seq_len,
    )

    ref = reference_forward(x, params, num_layers=num_layers, seq_len=seq_len)

    # f32-operand path (tight tolerance).
    out_f32 = jax.block_until_ready(rnn_lstm_forward(
        x, params, num_layers=num_layers, seq_len=seq_len,
        num_classes=num_classes, hidden_size=hidden_size,
        compute_dtype=jnp.float32))
    assert out_f32.shape == (batch, num_classes)
    assert jnp.allclose(out_f32, ref, atol=1e-4, rtol=1e-4), "f32 kernel mismatch vs reference"

    # bf16-operand / f32-accumulate path (MXU-native on v6e/v7x; f32 gate math & cell
    # state retained, so only matmul operand rounding differs -> looser tolerance).
    out_bf16 = jax.block_until_ready(rnn_lstm_forward(
        x, params, num_layers=num_layers, seq_len=seq_len,
        num_classes=num_classes, hidden_size=hidden_size,
        compute_dtype=jnp.bfloat16))
    assert out_bf16.shape == (batch, num_classes)
    assert jnp.allclose(out_bf16, ref, atol=5e-2, rtol=5e-2), "bf16 kernel mismatch vs reference"

    print("KERNEL_OK")
</pallas_src>

<mosaic_0001>
module attributes {stable_mosaic.version = 11 : i64} {
  func.func @rnn_lstm_kernel(%arg0: i32, %arg1: memref<1x64x32xf32, #tpu.memory_space<vmem>>, %arg2: memref<32x128xf32, #tpu.memory_space<vmem>>, %arg3: memref<32x128xf32, #tpu.memory_space<vmem>>, %arg4: memref<1x128xf32, #tpu.memory_space<vmem>>, %arg5: memref<32x128xf32, #tpu.memory_space<vmem>>, %arg6: memref<32x128xf32, #tpu.memory_space<vmem>>, %arg7: memref<1x128xf32, #tpu.memory_space<vmem>>, %arg8: memref<256x128xf32, #tpu.memory_space<vmem>>, %arg9: memref<1x128xf32, #tpu.memory_space<vmem>>, %arg10: memref<8x128xf32, #tpu.memory_space<vmem>>, %arg11: memref<64x128xf32, #tpu.memory_space<vmem>>, %arg12: memref<8x256xf32, #tpu.memory_space<vmem>>, %arg13: memref<64x32xf32, #tpu.memory_space<vmem>>) attributes {dimension_semantics = [#tpu.dimension_semantics<parallel>], iteration_bounds = array<i64: 1>, scalar_prefetch = 0 : i64, scratch_operands = 3 : i64, tpu.core_type = #tpu.core_type<tc>, window_params = [{transform_indices = @transform_0, window_bounds = array<i64: 1, 64, 32>}, {pipeline_mode = #tpu.pipeline_mode<synchronous>, transform_indices = @transform_1, window_bounds = array<i64: 32, 128>}, {pipeline_mode = #tpu.pipeline_mode<synchronous>, transform_indices = @transform_2, window_bounds = array<i64: 32, 128>}, {pipeline_mode = #tpu.pipeline_mode<synchronous>, transform_indices = @transform_3, window_bounds = array<i64: 1, 128>}, {pipeline_mode = #tpu.pipeline_mode<synchronous>, transform_indices = @transform_4, window_bounds = array<i64: 32, 128>}, {pipeline_mode = #tpu.pipeline_mode<synchronous>, transform_indices = @transform_5, window_bounds = array<i64: 32, 128>}, {pipeline_mode = #tpu.pipeline_mode<synchronous>, transform_indices = @transform_6, window_bounds = array<i64: 1, 128>}, {pipeline_mode = #tpu.pipeline_mode<synchronous>, transform_indices = @transform_7, window_bounds = array<i64: 256, 128>}, {pipeline_mode = #tpu.pipeline_mode<synchronous>, transform_indices = @transform_8, window_bounds = array<i64: 1, 128>}, {transform_indices = @transform_9, window_bounds = array<i64: 8, 128>}]} {
    %c0 = arith.constant 0 : index
    %c0_0 = arith.constant 0 : index
    %0 = vector.load %arg2[%c0, %c0_0] : memref<32x128xf32, #tpu.memory_space<vmem>>, vector<32x128xf32>
    %c0_1 = arith.constant 0 : index
    %c0_2 = arith.constant 0 : index
    %1 = vector.load %arg3[%c0_1, %c0_2] : memref<32x128xf32, #tpu.memory_space<vmem>>, vector<32x128xf32>
    %c0_3 = arith.constant 0 : index
    %c0_4 = arith.constant 0 : index
    %2 = vector.load %arg4[%c0_3, %c0_4] : memref<1x128xf32, #tpu.memory_space<vmem>>, vector<1x128xf32>
    %c0_5 = arith.constant 0 : index
    %c0_6 = arith.constant 0 : index
    %c0_7 = arith.constant 0 : index
    %3 = vector.load %arg1[%c0_5, %c0_6, %c0_7] : memref<1x64x32xf32, #tpu.memory_space<vmem>>, vector<1x64x32xf32>
    %4 = vector.shape_cast %3 : vector<1x64x32xf32> to vector<64x32xf32>
    %cst = arith.constant dense<0.000000e+00> : vector<64x128xf32>
    %5 = tpu.matmul %4, %0, %cst {dimension_numbers = #tpu.dot_dimension_numbers<[1], [0], [0], [1], [0, 0, 1, 1], [], []>} : vector<64x32xf32>, vector<32x128xf32>, vector<64x128xf32> -> vector<64x128xf32>
    %6 = vector.broadcast %2 : vector<1x128xf32> to vector<64x128xf32>
    %7 = arith.addf %5, %6 : vector<64x128xf32>
    %c0_8 = arith.constant 0 : index
    %c0_9 = arith.constant 0 : index
    %8 = vector.load %arg11[%c0_8, %c0_9] : memref<64x128xf32, #tpu.memory_space<vmem>>, vector<64x128xf32>
    tpu.vector_store %arg11[%c0_8, %c0_9], %7 {strides = array<i32>} : memref<64x128xf32, #tpu.memory_space<vmem>>, vector<64x128xf32>,
    %cst_10 = arith.constant 0.000000e+00 : f32
    %9 = vector.broadcast %cst_10 : f32 to vector<8x32xf32>
    %cst_11 = arith.constant 0.000000e+00 : f32
    %10 = vector.broadcast %cst_11 : f32 to vector<8x32xf32>
    %c0_12 = arith.constant 0 : index
    %c0_13 = arith.constant 0 : index
    %11 = vector.load %arg11[%c0_12, %c0_13] : memref<64x128xf32, #tpu.memory_space<vmem>>, vector<8x128xf32>
    %cst_14 = arith.constant dense<0.000000e+00> : vector<8x128xf32>
    %12 = tpu.matmul %9, %1, %cst_14 {dimension_numbers = #tpu.dot_dimension_numbers<[1], [0], [0], [1], [0, 0, 1, 1], [], []>} : vector<8x32xf32>, vector<32x128xf32>, vector<8x128xf32> -> vector<8x128xf32>
    %13 = arith.addf %11, %12 : vector<8x128xf32>
    %14 = vector.extract_strided_slice %13 {offsets = [0, 0], sizes = [8, 32], strides = [1, 1]} : vector<8x128xf32> to vector<8x32xf32>
    %15 = arith.negf %14 : vector<8x32xf32>
    %16 = math.exp %15 : vector<8x32xf32>
    %cst_15 = arith.constant 1.000000e+00 : f32
    %17 = vector.broadcast %cst_15 : f32 to vector<8x32xf32>
    %18 = arith.addf %17, %16 : vector<8x32xf32>
    %19 = arith.divf %17, %18 : vector<8x32xf32>
    %20 = vector.extract_strided_slice %13 {offsets = [0, 32], sizes = [8, 32], strides = [1, 1]} : vector<8x128xf32> to vector<8x32xf32>
    %21 = arith.negf %20 : vector<8x32xf32>
    %22 = math.exp %21 : vector<8x32xf32>
    %cst_16 = arith.constant 1.000000e+00 : f32
    %23 = vector.broadcast %cst_16 : f32 to vector<8x32xf32>
    %24 = arith.addf %23, %22 : vector<8x32xf32>
    %25 = arith.divf %23, %24 : vector<8x32xf32>
    %26 = vector.extract_strided_slice %13 {offsets = [0, 64], sizes = [8, 32], strides = [1, 1]} : vector<8x128xf32> to vector<8x32xf32>
    %27 = math.tanh %26 : vector<8x32xf32>
    %28 = vector.extract_strided_slice %13 {offsets = [0, 96], sizes = [8, 32], strides = [1, 1]} : vector<8x128xf32> to vector<8x32xf32>
    %29 = arith.negf %28 : vector<8x32xf32>
    %30 = math.exp %29 : vector<8x32xf32>
    %cst_17 = arith.constant 1.000000e+00 : f32
    %31 = vector.broadcast %cst_17 : f32 to vector<8x32xf32>
    %32 = arith.addf %31, %30 : vector<8x32xf32>
    %33 = arith.divf %31, %32 : vector<8x32xf32>
    %34 = arith.mulf %25, %10 : vector<8x32xf32>
    %35 = arith.mulf %19, %27 : vector<8x32xf32>
    %36 = arith.addf %34, %35 : vector<8x32xf32>
    %37 = math.tanh %36 : vector<8x32xf32>
    %38 = arith.mulf %33, %37 : vector<8x32xf32>
    %c0_18 = arith.constant 0 : index
    %c0_19 = arith.constant 0 : index
    %39 = vector.load %arg13[%c0_18, %c0_19] : memref<64x32xf32, #tpu.memory_space<vmem>>, vector<8x32xf32>
    tpu.vector_store %arg13[%c0_18, %c0_19], %38 {strides = array<i32>} : memref<64x32xf32, #tpu.memory_space<vmem>>, vector<8x32xf32>,
    %c8 = arith.constant 8 : index
    %c0_20 = arith.constant 0 : index
    %40 = vector.load %arg11[%c8, %c0_20] : memref<64x128xf32, #tpu.memory_space<vmem>>, vector<8x128xf32>
    %cst_21 = arith.constant dense<0.000000e+00> : vector<8x128xf32>
    %41 = tpu.matmul %38, %1, %cst_21 {dimension_numbers = #tpu.dot_dimension_numbers<[1], [0], [0], [1], [0, 0, 1, 1], [], []>} : vector<8x32xf32>, vector<32x128xf32>, vector<8x128xf32> -> vector<8x128xf32>
    %42 = arith.addf %40, %41 : vector<8x128xf32>
    %43 = vector.extract_strided_slice %42 {offsets = [0, 0], sizes = [8, 32], strides = [1, 1]} : vector<8x128xf32> to vector<8x32xf32>
    %44 = arith.negf %43 : vector<8x32xf32>
    %45 = math.exp %44 : vector<8x32xf32>
    %cst_22 = arith.constant 1.000000e+00 : f32
    %46 = vector.broadcast %cst_22 : f32 to vector<8x32xf32>
    %47 = arith.addf %46, %45 : vector<8x32xf32>
    %48 = arith.divf %46, %47 : vector<8x32xf32>
    %49 = vector.extract_strided_slice %42 {offsets = [0, 32], sizes = [8, 32], strides = [1, 1]} : vector<8x128xf32> to vector<8x32xf32>
    %50 = arith.negf %49 : vector<8x32xf32>
    %51 = math.exp %50 : vector<8x32xf32>
    %cst_23 = arith.constant 1.000000e+00 : f32
    %52 = vector.broadcast %cst_23 : f32 to vector<8x32xf32>
    %53 = arith.addf %52, %51 : vector<8x32xf32>
    %54 = arith.divf %52, %53 : vector<8x32xf32>
    %55 = vector.extract_strided_slice %42 {offsets = [0, 64], sizes = [8, 32], strides = [1, 1]} : vector<8x128xf32> to vector<8x32xf32>
    %56 = math.tanh %55 : vector<8x32xf32>
    %57 = vector.extract_strided_slice %42 {offsets = [0, 96], sizes = [8, 32], strides = [1, 1]} : vector<8x128xf32> to vector<8x32xf32>
    %58 = arith.negf %57 : vector<8x32xf32>
    %59 = math.exp %58 : vector<8x32xf32>
    %cst_24 = arith.constant 1.000000e+00 : f32
    %60 = vector.broadcast %cst_24 : f32 to vector<8x32xf32>
    %61 = arith.addf %60, %59 : vector<8x32xf32>
    %62 = arith.divf %60, %61 : vector<8x32xf32>
    %63 = arith.mulf %54, %36 : vector<8x32xf32>
    %64 = arith.mulf %48, %56 : vector<8x32xf32>
    %65 = arith.addf %63, %64 : vector<8x32xf32>
    %66 = math.tanh %65 : vector<8x32xf32>
    %67 = arith.mulf %62, %66 : vector<8x32xf32>
    %c8_25 = arith.constant 8 : index
    %c0_26 = arith.constant 0 : index
    %68 = vector.load %arg13[%c8_25, %c0_26] : memref<64x32xf32, #tpu.memory_space<vmem>>, vector<8x32xf32>
    tpu.vector_store %arg13[%c8_25, %c0_26], %67 {strides = array<i32>} : memref<64x32xf32, #tpu.memory_space<vmem>>, vector<8x32xf32>,
    %c16 = arith.constant 16 : index
    %c0_27 = arith.constant 0 : index
    %69 = vector.load %arg11[%c16, %c0_27] : memref<64x128xf32, #tpu.memory_space<vmem>>, vector<8x128xf32>
    %cst_28 = arith.constant dense<0.000000e+00> : vector<8x128xf32>
    %70 = tpu.matmul %67, %1, %cst_28 {dimension_numbers = #tpu.dot_dimension_numbers<[1], [0], [0], [1], [0, 0, 1, 1], [], []>} : vector<8x32xf32>, vector<32x128xf32>, vector<8x128xf32> -> vector<8x128xf32>
    %71 = arith.addf %69, %70 : vector<8x128xf32>
    %72 = vector.extract_strided_slice %71 {offsets = [0, 0], sizes = [8, 32], strides = [1, 1]} : vector<8x128xf32> to vector<8x32xf32>
    %73 = arith.negf %72 : vector<8x32xf32>
    %74 = math.exp %73 : vector<8x32xf32>
    %cst_29 = arith.constant 1.000000e+00 : f32
    %75 = vector.broadcast %cst_29 : f32 to vector<8x32xf32>
    %76 = arith.addf %75, %74 : vector<8x32xf32>
    %77 = arith.divf %75, %76 : vector<8x32xf32>
    %78 = vector.extract_strided_slice %71 {offsets = [0, 32], sizes = [8, 32], strides = [1, 1]} : vector<8x128xf32> to vector<8x32xf32>
    %79 = arith.negf %78 : vector<8x32xf32>
    %80 = math.exp %79 : vector<8x32xf32>
    %cst_30 = arith.constant 1.000000e+00 : f32
    %81 = vector.broadcast %cst_30 : f32 to vector<8x32xf32>
    %82 = arith.addf %81, %80 : vector<8x32xf32>
    %83 = arith.divf %81, %82 : vector<8x32xf32>
    %84 = vector.extract_strided_slice %71 {offsets = [0, 64], sizes = [8, 32], strides = [1, 1]} : vector<8x128xf32> to vector<8x32xf32>
    %85 = math.tanh %84 : vector<8x32xf32>
    %86 = vector.extract_strided_slice %71 {offsets = [0, 96], sizes = [8, 32], strides = [1, 1]} : vector<8x128xf32> to vector<8x32xf32>
    %87 = arith.negf %86 : vector<8x32xf32>
    %88 = math.exp %87 : vector<8x32xf32>
    %cst_31 = arith.constant 1.000000e+00 : f32
    %89 = vector.broadcast %cst_31 : f32 to vector<8x32xf32>
    %90 = arith.addf %89, %88 : vector<8x32xf32>
    %91 = arith.divf %89, %90 : vector<8x32xf32>
    %92 = arith.mulf %83, %65 : vector<8x32xf32>
    %93 = arith.mulf %77, %85 : vector<8x32xf32>
    %94 = arith.addf %92, %93 : vector<8x32xf32>
    %95 = math.tanh %94 : vector<8x32xf32>
    %96 = arith.mulf %91, %95 : vector<8x32xf32>
    %c16_32 = arith.constant 16 : index
    %c0_33 = arith.constant 0 : index
    %97 = vector.load %arg13[%c16_32, %c0_33] : memref<64x32xf32, #tpu.memory_space<vmem>>, vector<8x32xf32>
    tpu.vector_store %arg13[%c16_32, %c0_33], %96 {strides = array<i32>} : memref<64x32xf32, #tpu.memory_space<vmem>>, vector<8x32xf32>,
    %c24 = arith.constant 24 : index
    %c0_34 = arith.constant 0 : index
    %98 = vector.load %arg11[%c24, %c0_34] : memref<64x128xf32, #tpu.memory_space<vmem>>, vector<8x128xf32>
    %cst_35 = arith.constant dense<0.000000e+00> : vector<8x128xf32>
    %99 = tpu.matmul %96, %1, %cst_35 {dimension_numbers = #tpu.dot_dimension_numbers<[1], [0], [0], [1], [0, 0, 1, 1], [], []>} : vector<8x32xf32>, vector<32x128xf32>, vector<8x128xf32> -> vector<8x128xf32>
    %100 = arith.addf %98, %99 : vector<8x128xf32>
    %101 = vector.extract_strided_slice %100 {offsets = [0, 0], sizes = [8, 32], strides = [1, 1]} : vector<8x128xf32> to vector<8x32xf32>
    %102 = arith.negf %101 : vector<8x32xf32>
    %103 = math.exp %102 : vector<8x32xf32>
    %cst_36 = arith.constant 1.000000e+00 : f32
    %104 = vector.broadcast %cst_36 : f32 to vector<8x32xf32>
    %105 = arith.addf %104, %103 : vector<8x32xf32>
    %106 = arith.divf %104, %105 : vector<8x32xf32>
    %107 = vector.extract_strided_slice %100 {offsets = [0, 32], sizes = [8, 32], strides = [1, 1]} : vector<8x128xf32> to vector<8x32xf32>
    %108 = arith.negf %107 : vector<8x32xf32>
    %109 = math.exp %108 : vector<8x32xf32>
    %cst_37 = arith.constant 1.000000e+00 : f32
    %110 = vector.broadcast %cst_37 : f32 to vector<8x32xf32>
    %111 = arith.addf %110, %109 : vector<8x32xf32>
    %112 = arith.divf %110, %111 : vector<8x32xf32>
    %113 = vector.extract_strided_slice %100 {offsets = [0, 64], sizes = [8, 32], strides = [1, 1]} : vector<8x128xf32> to vector<8x32xf32>
    %114 = math.tanh %113 : vector<8x32xf32>
    %115 = vector.extract_strided_slice %100 {offsets = [0, 96], sizes = [8, 32], strides = [1, 1]} : vector<8x128xf32> to vector<8x32xf32>
    %116 = arith.negf %115 : vector<8x32xf32>
    %117 = math.exp %116 : vector<8x32xf32>
    %cst_38 = arith.constant 1.000000e+00 : f32
    %118 = vector.broadcast %cst_38 : f32 to vector<8x32xf32>
    %119 = arith.addf %118, %117 : vector<8x32xf32>
    %120 = arith.divf %118, %119 : vector<8x32xf32>
    %121 = arith.mulf %112, %94 : vector<8x32xf32>
    %122 = arith.mulf %106, %114 : vector<8x32xf32>
    %123 = arith.addf %121, %122 : vector<8x32xf32>
    %124 = math.tanh %123 : vector<8x32xf32>
    %125 = arith.mulf %120, %124 : vector<8x32xf32>
    %c24_39 = arith.constant 24 : index
    %c0_40 = arith.constant 0 : index
    %126 = vector.load %arg13[%c24_39, %c0_40] : memref<64x32xf32, #tpu.memory_space<vmem>>, vector<8x32xf32>
    tpu.vector_store %arg13[%c24_39, %c0_40], %125 {strides = array<i32>} : memref<64x32xf32, #tpu.memory_space<vmem>>, vector<8x32xf32>,
    %c32 = arith.constant 32 : index
    %c0_41 = arith.constant 0 : index
    %127 = vector.load %arg11[%c32, %c0_41] : memref<64x128xf32, #tpu.memory_space<vmem>>, vector<8x128xf32>
    %cst_42 = arith.constant dense<0.000000e+00> : vector<8x128xf32>
    %128 = tpu.matmul %125, %1, %cst_42 {dimension_numbers = #tpu.dot_dimension_numbers<[1], [0], [0], [1], [0, 0, 1, 1], [], []>} : vector<8x32xf32>, vector<32x128xf32>, vector<8x128xf32> -> vector<8x128xf32>
    %129 = arith.addf %127, %128 : vector<8x128xf32>
    %130 = vector.extract_strided_slice %129 {offsets = [0, 0], sizes = [8, 32], strides = [1, 1]} : vector<8x128xf32> to vector<8x32xf32>
    %131 = arith.negf %130 : vector<8x32xf32>
    %132 = math.exp %131 : vector<8x32xf32>
    %cst_43 = arith.constant 1.000000e+00 : f32
    %133 = vector.broadcast %cst_43 : f32 to vector<8x32xf32>
    %134 = arith.addf %133, %132 : vector<8x32xf32>
    %135 = arith.divf %133, %134 : vector<8x32xf32>
    %136 = vector.extract_strided_slice %129 {offsets = [0, 32], sizes = [8, 32], strides = [1, 1]} : vector<8x128xf32> to vector<8x32xf32>
    %137 = arith.negf %136 : vector<8x32xf32>
    %138 = math.exp %137 : vector<8x32xf32>
    %cst_44 = arith.constant 1.000000e+00 : f32
    %139 = vector.broadcast %cst_44 : f32 to vector<8x32xf32>
    %140 = arith.addf %139, %138 : vector<8x32xf32>
    %141 = arith.divf %139, %140 : vector<8x32xf32>
    %142 = vector.extract_strided_slice %129 {offsets = [0, 64], sizes = [8, 32], strides = [1, 1]} : vector<8x128xf32> to vector<8x32xf32>
    %143 = math.tanh %142 : vector<8x32xf32>
    %144 = vector.extract_strided_slice %129 {offsets = [0, 96], sizes = [8, 32], strides = [1, 1]} : vector<8x128xf32> to vector<8x32xf32>
    %145 = arith.negf %144 : vector<8x32xf32>
    %146 = math.exp %145 : vector<8x32xf32>
    %cst_45 = arith.constant 1.000000e+00 : f32
    %147 = vector.broadcast %cst_45 : f32 to vector<8x32xf32>
    %148 = arith.addf %147, %146 : vector<8x32xf32>
    %149 = arith.divf %147, %148 : vector<8x32xf32>
    %150 = arith.mulf %141, %123 : vector<8x32xf32>
    %151 = arith.mulf %135, %143 : vector<8x32xf32>
    %152 = arith.addf %150, %151 : vector<8x32xf32>
    %153 = math.tanh %152 : vector<8x32xf32>
    %154 = arith.mulf %149, %153 : vector<8x32xf32>
    %c32_46 = arith.constant 32 : index
    %c0_47 = arith.constant 0 : index
    %155 = vector.load %arg13[%c32_46, %c0_47] : memref<64x32xf32, #tpu.memory_space<vmem>>, vector<8x32xf32>
    tpu.vector_store %arg13[%c32_46, %c0_47], %154 {strides = array<i32>} : memref<64x32xf32, #tpu.memory_space<vmem>>, vector<8x32xf32>,
    %c40 = arith.constant 40 : index
    %c0_48 = arith.constant 0 : index
    %156 = vector.load %arg11[%c40, %c0_48] : memref<64x128xf32, #tpu.memory_space<vmem>>, vector<8x128xf32>
    %cst_49 = arith.constant dense<0.000000e+00> : vector<8x128xf32>
    %157 = tpu.matmul %154, %1, %cst_49 {dimension_numbers = #tpu.dot_dimension_numbers<[1], [0], [0], [1], [0, 0, 1, 1], [], []>} : vector<8x32xf32>, vector<32x128xf32>, vector<8x128xf32> -> vector<8x128xf32>
    %158 = arith.addf %156, %157 : vector<8x128xf32>
    %159 = vector.extract_strided_slice %158 {offsets = [0, 0], sizes = [8, 32], strides = [1, 1]} : vector<8x128xf32> to vector<8x32xf32>
    %160 = arith.negf %159 : vector<8x32xf32>
    %161 = math.exp %160 : vector<8x32xf32>
    %cst_50 = arith.constant 1.000000e+00 : f32
    %162 = vector.broadcast %cst_50 : f32 to vector<8x32xf32>
    %163 = arith.addf %162, %161 : vector<8x32xf32>
    %164 = arith.divf %162, %163 : vector<8x32xf32>
    %165 = vector.extract_strided_slice %158 {offsets = [0, 32], sizes = [8, 32], strides = [1, 1]} : vector<8x128xf32> to vector<8x32xf32>
    %166 = arith.negf %165 : vector<8x32xf32>
    %167 = math.exp %166 : vector<8x32xf32>
    %cst_51 = arith.constant 1.000000e+00 : f32
    %168 = vector.broadcast %cst_51 : f32 to vector<8x32xf32>
    %169 = arith.addf %168, %167 : vector<8x32xf32>
    %170 = arith.divf %168, %169 : vector<8x32xf32>
    %171 = vector.extract_strided_slice %158 {offsets = [0, 64], sizes = [8, 32], strides = [1, 1]} : vector<8x128xf32> to vector<8x32xf32>
    %172 = math.tanh %171 : vector<8x32xf32>
    %173 = vector.extract_strided_slice %158 {offsets = [0, 96], sizes = [8, 32], strides = [1, 1]} : vector<8x128xf32> to vector<8x32xf32>
    %174 = arith.negf %173 : vector<8x32xf32>
    %175 = math.exp %174 : vector<8x32xf32>
    %cst_52 = arith.constant 1.000000e+00 : f32
    %176 = vector.broadcast %cst_52 : f32 to vector<8x32xf32>
    %177 = arith.addf %176, %175 : vector<8x32xf32>
    %178 = arith.divf %176, %177 : vector<8x32xf32>
    %179 = arith.mulf %170, %152 : vector<8x32xf32>
    %180 = arith.mulf %164, %172 : vector<8x32xf32>
    %181 = arith.addf %179, %180 : vector<8x32xf32>
    %182 = math.tanh %181 : vector<8x32xf32>
    %183 = arith.mulf %178, %182 : vector<8x32xf32>
    %c40_53 = arith.constant 40 : index
    %c0_54 = arith.constant 0 : index
    %184 = vector.load %arg13[%c40_53, %c0_54] : memref<64x32xf32, #tpu.memory_space<vmem>>, vector<8x32xf32>
    tpu.vector_store %arg13[%c40_53, %c0_54], %183 {strides = array<i32>} : memref<64x32xf32, #tpu.memory_space<vmem>>, vector<8x32xf32>,
    %c48 = arith.constant 48 : index
    %c0_55 = arith.constant 0 : index
    %185 = vector.load %arg11[%c48, %c0_55] : memref<64x128xf32, #tpu.memory_space<vmem>>, vector<8x128xf32>
    %cst_56 = arith.constant dense<0.000000e+00> : vector<8x128xf32>
    %186 = tpu.matmul %183, %1, %cst_56 {dimension_numbers = #tpu.dot_dimension_numbers<[1], [0], [0], [1], [0, 0, 1, 1], [], []>} : vector<8x32xf32>, vector<32x128xf32>, vector<8x128xf32> -> vector<8x128xf32>
    %187 = arith.addf %185, %186 : vector<8x128xf32>
    %188 = vector.extract_strided_slice %187 {offsets = [0, 0], sizes = [8, 32], strides = [1, 1]} : vector<8x128xf32> to vector<8x32xf32>
    %189 = arith.negf %188 : vector<8x32xf32>
    %190 = math.exp %189 : vector<8x32xf32>
    %cst_57 = arith.constant 1.000000e+00 : f32
    %191 = vector.broadcast %cst_57 : f32 to vector<8x32xf32>
    %192 = arith.addf %191, %190 : vector<8x32xf32>
    %193 = arith.divf %191, %192 : vector<8x32xf32>
    %194 = vector.extract_strided_slice %187 {offsets = [0, 32], sizes = [8, 32], strides = [1, 1]} : vector<8x128xf32> to vector<8x32xf32>
    %195 = arith.negf %194 : vector<8x32xf32>
    %196 = math.exp %195 : vector<8x32xf32>
    %cst_58 = arith.constant 1.000000e+00 : f32
    %197 = vector.broadcast %cst_58 : f32 to vector<8x32xf32>
    %198 = arith.addf %197, %196 : vector<8x32xf32>
    %199 = arith.divf %197, %198 : vector<8x32xf32>
    %200 = vector.extract_strided_slice %187 {offsets = [0, 64], sizes = [8, 32], strides = [1, 1]} : vector<8x128xf32> to vector<8x32xf32>
    %201 = math.tanh %200 : vector<8x32xf32>
    %202 = vector.extract_strided_slice %187 {offsets = [0, 96], sizes = [8, 32], strides = [1, 1]} : vector<8x128xf32> to vector<8x32xf32>
    %203 = arith.negf %202 : vector<8x32xf32>
    %204 = math.exp %203 : vector<8x32xf32>
    %cst_59 = arith.constant 1.000000e+00 : f32
    %205 = vector.broadcast %cst_59 : f32 to vector<8x32xf32>
    %206 = arith.addf %205, %204 : vector<8x32xf32>
    %207 = arith.divf %205, %206 : vector<8x32xf32>
    %208 = arith.mulf %199, %181 : vector<8x32xf32>
    %209 = arith.mulf %193, %201 : vector<8x32xf32>
    %210 = arith.addf %208, %209 : vector<8x32xf32>
    %211 = math.tanh %210 : vector<8x32xf32>
    %212 = arith.mulf %207, %211 : vector<8x32xf32>
    %c48_60 = arith.constant 48 : index
    %c0_61 = arith.constant 0 : index
    %213 = vector.load %arg13[%c48_60, %c0_61] : memref<64x32xf32, #tpu.memory_space<vmem>>, vector<8x32xf32>
    tpu.vector_store %arg13[%c48_60, %c0_61], %212 {strides = array<i32>} : memref<64x32xf32, #tpu.memory_space<vmem>>, vector<8x32xf32>,
    %c56 = arith.constant 56 : index
    %c0_62 = arith.constant 0 : index
    %214 = vector.load %arg11[%c56, %c0_62] : memref<64x128xf32, #tpu.memory_space<vmem>>, vector<8x128xf32>
    %cst_63 = arith.constant dense<0.000000e+00> : vector<8x128xf32>
    %215 = tpu.matmul %212, %1, %cst_63 {dimension_numbers = #tpu.dot_dimension_numbers<[1], [0], [0], [1], [0, 0, 1, 1], [], []>} : vector<8x32xf32>, vector<32x128xf32>, vector<8x128xf32> -> vector<8x128xf32>
    %216 = arith.addf %214, %215 : vector<8x128xf32>
    %217 = vector.extract_strided_slice %216 {offsets = [0, 0], sizes = [8, 32], strides = [1, 1]} : vector<8x128xf32> to vector<8x32xf32>
    %218 = arith.negf %217 : vector<8x32xf32>
    %219 = math.exp %218 : vector<8x32xf32>
    %cst_64 = arith.constant 1.000000e+00 : f32
    %220 = vector.broadcast %cst_64 : f32 to vector<8x32xf32>
    %221 = arith.addf %220, %219 : vector<8x32xf32>
    %222 = arith.divf %220, %221 : vector<8x32xf32>
    %223 = vector.extract_strided_slice %216 {offsets = [0, 32], sizes = [8, 32], strides = [1, 1]} : vector<8x128xf32> to vector<8x32xf32>
    %224 = arith.negf %223 : vector<8x32xf32>
    %225 = math.exp %224 : vector<8x32xf32>
    %cst_65 = arith.constant 1.000000e+00 : f32
    %226 = vector.broadcast %cst_65 : f32 to vector<8x32xf32>
    %227 = arith.addf %226, %225 : vector<8x32xf32>
    %228 = arith.divf %226, %227 : vector<8x32xf32>
    %229 = vector.extract_strided_slice %216 {offsets = [0, 64], sizes = [8, 32], strides = [1, 1]} : vector<8x128xf32> to vector<8x32xf32>
    %230 = math.tanh %229 : vector<8x32xf32>
    %231 = vector.extract_strided_slice %216 {offsets = [0, 96], sizes = [8, 32], strides = [1, 1]} : vector<8x128xf32> to vector<8x32xf32>
    %232 = arith.negf %231 : vector<8x32xf32>
    %233 = math.exp %232 : vector<8x32xf32>
    %cst_66 = arith.constant 1.000000e+00 : f32
    %234 = vector.broadcast %cst_66 : f32 to vector<8x32xf32>
    %235 = arith.addf %234, %233 : vector<8x32xf32>
    %236 = arith.divf %234, %235 : vector<8x32xf32>
    %237 = arith.mulf %228, %210 : vector<8x32xf32>
    %238 = arith.mulf %222, %230 : vector<8x32xf32>
    %239 = arith.addf %237, %238 : vector<8x32xf32>
    %240 = math.tanh %239 : vector<8x32xf32>
    %241 = arith.mulf %236, %240 : vector<8x32xf32>
    %c56_67 = arith.constant 56 : index
    %c0_68 = arith.constant 0 : index
    %242 = vector.load %arg13[%c56_67, %c0_68] : memref<64x32xf32, #tpu.memory_space<vmem>>, vector<8x32xf32>
    tpu.vector_store %arg13[%c56_67, %c0_68], %241 {strides = array<i32>} : memref<64x32xf32, #tpu.memory_space<vmem>>, vector<8x32xf32>,
    %c0_69 = arith.constant 0 : index
    %c0_70 = arith.constant 0 : index
    %243 = vector.load %arg5[%c0_69, %c0_70] : memref<32x128xf32, #tpu.memory_space<vmem>>, vector<32x128xf32>
    %c0_71 = arith.constant 0 : index
    %c0_72 = arith.constant 0 : index
    %244 = vector.load %arg6[%c0_71, %c0_72] : memref<32x128xf32, #tpu.memory_space<vmem>>, vector<32x128xf32>
    %c0_73 = arith.constant 0 : index
    %c0_74 = arith.constant 0 : index
    %245 = vector.load %arg7[%c0_73, %c0_74] : memref<1x128xf32, #tpu.memory_space<vmem>>, vector<1x128xf32>
    %c0_75 = arith.constant 0 : index
    %c0_76 = arith.constant 0 : index
    %246 = vector.load %arg13[%c0_75, %c0_76] : memref<64x32xf32, #tpu.memory_space<vmem>>, vector<64x32xf32>
    %cst_77 = arith.constant dense<0.000000e+00> : vector<64x128xf32>
    %247 = tpu.matmul %246, %243, %cst_77 {dimension_numbers = #tpu.dot_dimension_numbers<[1], [0], [0], [1], [0, 0, 1, 1], [], []>} : vector<64x32xf32>, vector<32x128xf32>, vector<64x128xf32> -> vector<64x128xf32>
    %248 = vector.broadcast %245 : vector<1x128xf32> to vector<64x128xf32>
    %249 = arith.addf %247, %248 : vector<64x128xf32>
    %c0_78 = arith.constant 0 : index
    %c0_79 = arith.constant 0 : index
    %250 = vector.load %arg11[%c0_78, %c0_79] : memref<64x128xf32, #tpu.memory_space<vmem>>, vector<64x128xf32>
    tpu.vector_store %arg11[%c0_78, %c0_79], %249 {strides = array<i32>} : memref<64x128xf32, #tpu.memory_space<vmem>>, vector<64x128xf32>,
    %cst_80 = arith.constant 0.000000e+00 : f32
    %251 = vector.broadcast %cst_80 : f32 to vector<8x32xf32>
    %cst_81 = arith.constant 0.000000e+00 : f32
    %252 = vector.broadcast %cst_81 : f32 to vector<8x32xf32>
    %c0_82 = arith.constant 0 : index
    %c0_83 = arith.constant 0 : index
    %253 = vector.load %arg11[%c0_82, %c0_83] : memref<64x128xf32, #tpu.memory_space<vmem>>, vector<8x128xf32>
    %cst_84 = arith.constant dense<0.000000e+00> : vector<8x128xf32>
    %254 = tpu.matmul %251, %244, %cst_84 {dimension_numbers = #tpu.dot_dimension_numbers<[1], [0], [0], [1], [0, 0, 1, 1], [], []>} : vector<8x32xf32>, vector<32x128xf32>, vector<8x128xf32> -> vector<8x128xf32>
    %255 = arith.addf %253, %254 : vector<8x128xf32>
    %256 = vector.extract_strided_slice %255 {offsets = [0, 0], sizes = [8, 32], strides = [1, 1]} : vector<8x128xf32> to vector<8x32xf32>
    %257 = arith.negf %256 : vector<8x32xf32>
    %258 = math.exp %257 : vector<8x32xf32>
    %cst_85 = arith.constant 1.000000e+00 : f32
    %259 = vector.broadcast %cst_85 : f32 to vector<8x32xf32>
    %260 = arith.addf %259, %258 : vector<8x32xf32>
    %261 = arith.divf %259, %260 : vector<8x32xf32>
    %262 = vector.extract_strided_slice %255 {offsets = [0, 32], sizes = [8, 32], strides = [1, 1]} : vector<8x128xf32> to vector<8x32xf32>
    %263 = arith.negf %262 : vector<8x32xf32>
    %264 = math.exp %263 : vector<8x32xf32>
    %cst_86 = arith.constant 1.000000e+00 : f32
    %265 = vector.broadcast %cst_86 : f32 to vector<8x32xf32>
    %266 = arith.addf %265, %264 : vector<8x32xf32>
    %267 = arith.divf %265, %266 : vector<8x32xf32>
    %268 = vector.extract_strided_slice %255 {offsets = [0, 64], sizes = [8, 32], strides = [1, 1]} : vector<8x128xf32> to vector<8x32xf32>
    %269 = math.tanh %268 : vector<8x32xf32>
    %270 = vector.extract_strided_slice %255 {offsets = [0, 96], sizes = [8, 32], strides = [1, 1]} : vector<8x128xf32> to vector<8x32xf32>
    %271 = arith.negf %270 : vector<8x32xf32>
    %272 = math.exp %271 : vector<8x32xf32>
    %cst_87 = arith.constant 1.000000e+00 : f32
    %273 = vector.broadcast %cst_87 : f32 to vector<8x32xf32>
    %274 = arith.addf %273, %272 : vector<8x32xf32>
    %275 = arith.divf %273, %274 : vector<8x32xf32>
    %276 = arith.mulf %267, %252 : vector<8x32xf32>
    %277 = arith.mulf %261, %269 : vector<8x32xf32>
    %278 = arith.addf %276, %277 : vector<8x32xf32>
    %279 = math.tanh %278 : vector<8x32xf32>
    %280 = arith.mulf %275, %279 : vector<8x32xf32>
    %c0_88 = arith.constant 0 : index
    %c0_89 = arith.constant 0 : index
    %281 = vector.load %arg12[%c0_88, %c0_89] : memref<8x256xf32, #tpu.memory_space<vmem>>, vector<8x32xf32>
    tpu.vector_store %arg12[%c0_88, %c0_89], %280 {strides = array<i32>} : memref<8x256xf32, #tpu.memory_space<vmem>>, vector<8x32xf32>,
    %c8_90 = arith.constant 8 : index
    %c0_91 = arith.constant 0 : index
    %282 = vector.load %arg11[%c8_90, %c0_91] : memref<64x128xf32, #tpu.memory_space<vmem>>, vector<8x128xf32>
    %cst_92 = arith.constant dense<0.000000e+00> : vector<8x128xf32>
    %283 = tpu.matmul %280, %244, %cst_92 {dimension_numbers = #tpu.dot_dimension_numbers<[1], [0], [0], [1], [0, 0, 1, 1], [], []>} : vector<8x32xf32>, vector<32x128xf32>, vector<8x128xf32> -> vector<8x128xf32>
    %284 = arith.addf %282, %283 : vector<8x128xf32>
    %285 = vector.extract_strided_slice %284 {offsets = [0, 0], sizes = [8, 32], strides = [1, 1]} : vector<8x128xf32> to vector<8x32xf32>
    %286 = arith.negf %285 : vector<8x32xf32>
    %287 = math.exp %286 : vector<8x32xf32>
    %cst_93 = arith.constant 1.000000e+00 : f32
    %288 = vector.broadcast %cst_93 : f32 to vector<8x32xf32>
    %289 = arith.addf %288, %287 : vector<8x32xf32>
    %290 = arith.divf %288, %289 : vector<8x32xf32>
    %291 = vector.extract_strided_slice %284 {offsets = [0, 32], sizes = [8, 32], strides = [1, 1]} : vector<8x128xf32> to vector<8x32xf32>
    %292 = arith.negf %291 : vector<8x32xf32>
    %293 = math.exp %292 : vector<8x32xf32>
    %cst_94 = arith.constant 1.000000e+00 : f32
    %294 = vector.broadcast %cst_94 : f32 to vector<8x32xf32>
    %295 = arith.addf %294, %293 : vector<8x32xf32>
    %296 = arith.divf %294, %295 : vector<8x32xf32>
    %297 = vector.extract_strided_slice %284 {offsets = [0, 64], sizes = [8, 32], strides = [1, 1]} : vector<8x128xf32> to vector<8x32xf32>
    %298 = math.tanh %297 : vector<8x32xf32>
    %299 = vector.extract_strided_slice %284 {offsets = [0, 96], sizes = [8, 32], strides = [1, 1]} : vector<8x128xf32> to vector<8x32xf32>
    %300 = arith.negf %299 : vector<8x32xf32>
    %301 = math.exp %300 : vector<8x32xf32>
    %cst_95 = arith.constant 1.000000e+00 : f32
    %302 = vector.broadcast %cst_95 : f32 to vector<8x32xf32>
    %303 = arith.addf %302, %301 : vector<8x32xf32>
    %304 = arith.divf %302, %303 : vector<8x32xf32>
    %305 = arith.mulf %296, %278 : vector<8x32xf32>
    %306 = arith.mulf %290, %298 : vector<8x32xf32>
    %307 = arith.addf %305, %306 : vector<8x32xf32>
    %308 = math.tanh %307 : vector<8x32xf32>
    %309 = arith.mulf %304, %308 : vector<8x32xf32>
    %c0_96 = arith.constant 0 : index
    %c32_97 = arith.constant 32 : index
    %310 = vector.load %arg12[%c0_96, %c32_97] : memref<8x256xf32, #tpu.memory_space<vmem>>, vector<8x32xf32>
    tpu.vector_store %arg12[%c0_96, %c32_97], %309 {strides = array<i32>} : memref<8x256xf32, #tpu.memory_space<vmem>>, vector<8x32xf32>,
    %c16_98 = arith.constant 16 : index
    %c0_99 = arith.constant 0 : index
    %311 = vector.load %arg11[%c16_98, %c0_99] : memref<64x128xf32, #tpu.memory_space<vmem>>, vector<8x128xf32>
    %cst_100 = arith.constant dense<0.000000e+00> : vector<8x128xf32>
    %312 = tpu.matmul %309, %244, %cst_100 {dimension_numbers = #tpu.dot_dimension_numbers<[1], [0], [0], [1], [0, 0, 1, 1], [], []>} : vector<8x32xf32>, vector<32x128xf32>, vector<8x128xf32> -> vector<8x128xf32>
    %313 = arith.addf %311, %312 : vector<8x128xf32>
    %314 = vector.extract_strided_slice %313 {offsets = [0, 0], sizes = [8, 32], strides = [1, 1]} : vector<8x128xf32> to vector<8x32xf32>
    %315 = arith.negf %314 : vector<8x32xf32>
    %316 = math.exp %315 : vector<8x32xf32>
    %cst_101 = arith.constant 1.000000e+00 : f32
    %317 = vector.broadcast %cst_101 : f32 to vector<8x32xf32>
    %318 = arith.addf %317, %316 : vector<8x32xf32>
    %319 = arith.divf %317, %318 : vector<8x32xf32>
    %320 = vector.extract_strided_slice %313 {offsets = [0, 32], sizes = [8, 32], strides = [1, 1]} : vector<8x128xf32> to vector<8x32xf32>
    %321 = arith.negf %320 : vector<8x32xf32>
    %322 = math.exp %321 : vector<8x32xf32>
    %cst_102 = arith.constant 1.000000e+00 : f32
    %323 = vector.broadcast %cst_102 : f32 to vector<8x32xf32>
    %324 = arith.addf %323, %322 : vector<8x32xf32>
    %325 = arith.divf %323, %324 : vector<8x32xf32>
    %326 = vector.extract_strided_slice %313 {offsets = [0, 64], sizes = [8, 32], strides = [1, 1]} : vector<8x128xf32> to vector<8x32xf32>
    %327 = math.tanh %326 : vector<8x32xf32>
    %328 = vector.extract_strided_slice %313 {offsets = [0, 96], sizes = [8, 32], strides = [1, 1]} : vector<8x128xf32> to vector<8x32xf32>
    %329 = arith.negf %328 : vector<8x32xf32>
    %330 = math.exp %329 : vector<8x32xf32>
    %cst_103 = arith.constant 1.000000e+00 : f32
    %331 = vector.broadcast %cst_103 : f32 to vector<8x32xf32>
    %332 = arith.addf %331, %330 : vector<8x32xf32>
    %333 = arith.divf %331, %332 : vector<8x32xf32>
    %334 = arith.mulf %325, %307 : vector<8x32xf32>
    %335 = arith.mulf %319, %327 : vector<8x32xf32>
    %336 = arith.addf %334, %335 : vector<8x32xf32>
    %337 = math.tanh %336 : vector<8x32xf32>
    %338 = arith.mulf %333, %337 : vector<8x32xf32>
    %c0_104 = arith.constant 0 : index
    %c64 = arith.constant 64 : index
    %339 = vector.load %arg12[%c0_104, %c64] : memref<8x256xf32, #tpu.memory_space<vmem>>, vector<8x32xf32>
    tpu.vector_store %arg12[%c0_104, %c64], %338 {strides = array<i32>} : memref<8x256xf32, #tpu.memory_space<vmem>>, vector<8x32xf32>,
    %c24_105 = arith.constant 24 : index
    %c0_106 = arith.constant 0 : index
    %340 = vector.load %arg11[%c24_105, %c0_106] : memref<64x128xf32, #tpu.memory_space<vmem>>, vector<8x128xf32>
    %cst_107 = arith.constant dense<0.000000e+00> : vector<8x128xf32>
    %341 = tpu.matmul %338, %244, %cst_107 {dimension_numbers = #tpu.dot_dimension_numbers<[1], [0], [0], [1], [0, 0, 1, 1], [], []>} : vector<8x32xf32>, vector<32x128xf32>, vector<8x128xf32> -> vector<8x128xf32>
    %342 = arith.addf %340, %341 : vector<8x128xf32>
    %343 = vector.extract_strided_slice %342 {offsets = [0, 0], sizes = [8, 32], strides = [1, 1]} : vector<8x128xf32> to vector<8x32xf32>
    %344 = arith.negf %343 : vector<8x32xf32>
    %345 = math.exp %344 : vector<8x32xf32>
    %cst_108 = arith.constant 1.000000e+00 : f32
    %346 = vector.broadcast %cst_108 : f32 to vector<8x32xf32>
    %347 = arith.addf %346, %345 : vector<8x32xf32>
    %348 = arith.divf %346, %347 : vector<8x32xf32>
    %349 = vector.extract_strided_slice %342 {offsets = [0, 32], sizes = [8, 32], strides = [1, 1]} : vector<8x128xf32> to vector<8x32xf32>
    %350 = arith.negf %349 : vector<8x32xf32>
    %351 = math.exp %350 : vector<8x32xf32>
    %cst_109 = arith.constant 1.000000e+00 : f32
    %352 = vector.broadcast %cst_109 : f32 to vector<8x32xf32>
    %353 = arith.addf %352, %351 : vector<8x32xf32>
    %354 = arith.divf %352, %353 : vector<8x32xf32>
    %355 = vector.extract_strided_slice %342 {offsets = [0, 64], sizes = [8, 32], strides = [1, 1]} : vector<8x128xf32> to vector<8x32xf32>
    %356 = math.tanh %355 : vector<8x32xf32>
    %357 = vector.extract_strided_slice %342 {offsets = [0, 96], sizes = [8, 32], strides = [1, 1]} : vector<8x128xf32> to vector<8x32xf32>
    %358 = arith.negf %357 : vector<8x32xf32>
    %359 = math.exp %358 : vector<8x32xf32>
    %cst_110 = arith.constant 1.000000e+00 : f32
    %360 = vector.broadcast %cst_110 : f32 to vector<8x32xf32>
    %361 = arith.addf %360, %359 : vector<8x32xf32>
    %362 = arith.divf %360, %361 : vector<8x32xf32>
    %363 = arith.mulf %354, %336 : vector<8x32xf32>
    %364 = arith.mulf %348, %356 : vector<8x32xf32>
    %365 = arith.addf %363, %364 : vector<8x32xf32>
    %366 = math.tanh %365 : vector<8x32xf32>
    %367 = arith.mulf %362, %366 : vector<8x32xf32>
    %c0_111 = arith.constant 0 : index
    %c96 = arith.constant 96 : index
    %368 = vector.load %arg12[%c0_111, %c96] : memref<8x256xf32, #tpu.memory_space<vmem>>, vector<8x32xf32>
    tpu.vector_store %arg12[%c0_111, %c96], %367 {strides = array<i32>} : memref<8x256xf32, #tpu.memory_space<vmem>>, vector<8x32xf32>,
    %c32_112 = arith.constant 32 : index
    %c0_113 = arith.constant 0 : index
    %369 = vector.load %arg11[%c32_112, %c0_113] : memref<64x128xf32, #tpu.memory_space<vmem>>, vector<8x128xf32>
    %cst_114 = arith.constant dense<0.000000e+00> : vector<8x128xf32>
    %370 = tpu.matmul %367, %244, %cst_114 {dimension_numbers = #tpu.dot_dimension_numbers<[1], [0], [0], [1], [0, 0, 1, 1], [], []>} : vector<8x32xf32>, vector<32x128xf32>, vector<8x128xf32> -> vector<8x128xf32>
    %371 = arith.addf %369, %370 : vector<8x128xf32>
    %372 = vector.extract_strided_slice %371 {offsets = [0, 0], sizes = [8, 32], strides = [1, 1]} : vector<8x128xf32> to vector<8x32xf32>
    %373 = arith.negf %372 : vector<8x32xf32>
    %374 = math.exp %373 : vector<8x32xf32>
    %cst_115 = arith.constant 1.000000e+00 : f32
    %375 = vector.broadcast %cst_115 : f32 to vector<8x32xf32>
    %376 = arith.addf %375, %374 : vector<8x32xf32>
    %377 = arith.divf %375, %376 : vector<8x32xf32>
    %378 = vector.extract_strided_slice %371 {offsets = [0, 32], sizes = [8, 32], strides = [1, 1]} : vector<8x128xf32> to vector<8x32xf32>
    %379 = arith.negf %378 : vector<8x32xf32>
    %380 = math.exp %379 : vector<8x32xf32>
    %cst_116 = arith.constant 1.000000e+00 : f32
    %381 = vector.broadcast %cst_116 : f32 to vector<8x32xf32>
    %382 = arith.addf %381, %380 : vector<8x32xf32>
    %383 = arith.divf %381, %382 : vector<8x32xf32>
    %384 = vector.extract_strided_slice %371 {offsets = [0, 64], sizes = [8, 32], strides = [1, 1]} : vector<8x128xf32> to vector<8x32xf32>
    %385 = math.tanh %384 : vector<8x32xf32>
    %386 = vector.extract_strided_slice %371 {offsets = [0, 96], sizes = [8, 32], strides = [1, 1]} : vector<8x128xf32> to vector<8x32xf32>
    %387 = arith.negf %386 : vector<8x32xf32>
    %388 = math.exp %387 : vector<8x32xf32>
    %cst_117 = arith.constant 1.000000e+00 : f32
    %389 = vector.broadcast %cst_117 : f32 to vector<8x32xf32>
    %390 = arith.addf %389, %388 : vector<8x32xf32>
    %391 = arith.divf %389, %390 : vector<8x32xf32>
    %392 = arith.mulf %383, %365 : vector<8x32xf32>
    %393 = arith.mulf %377, %385 : vector<8x32xf32>
    %394 = arith.addf %392, %393 : vector<8x32xf32>
    %395 = math.tanh %394 : vector<8x32xf32>
    %396 = arith.mulf %391, %395 : vector<8x32xf32>
    %c0_118 = arith.constant 0 : index
    %c128 = arith.constant 128 : index
    %397 = vector.load %arg12[%c0_118, %c128] : memref<8x256xf32, #tpu.memory_space<vmem>>, vector<8x32xf32>
    tpu.vector_store %arg12[%c0_118, %c128], %396 {strides = array<i32>} : memref<8x256xf32, #tpu.memory_space<vmem>>, vector<8x32xf32>,
    %c40_119 = arith.constant 40 : index
    %c0_120 = arith.constant 0 : index
    %398 = vector.load %arg11[%c40_119, %c0_120] : memref<64x128xf32, #tpu.memory_space<vmem>>, vector<8x128xf32>
    %cst_121 = arith.constant dense<0.000000e+00> : vector<8x128xf32>
    %399 = tpu.matmul %396, %244, %cst_121 {dimension_numbers = #tpu.dot_dimension_numbers<[1], [0], [0], [1], [0, 0, 1, 1], [], []>} : vector<8x32xf32>, vector<32x128xf32>, vector<8x128xf32> -> vector<8x128xf32>
    %400 = arith.addf %398, %399 : vector<8x128xf32>
    %401 = vector.extract_strided_slice %400 {offsets = [0, 0], sizes = [8, 32], strides = [1, 1]} : vector<8x128xf32> to vector<8x32xf32>
    %402 = arith.negf %401 : vector<8x32xf32>
    %403 = math.exp %402 : vector<8x32xf32>
    %cst_122 = arith.constant 1.000000e+00 : f32
    %404 = vector.broadcast %cst_122 : f32 to vector<8x32xf32>
    %405 = arith.addf %404, %403 : vector<8x32xf32>
    %406 = arith.divf %404, %405 : vector<8x32xf32>
    %407 = vector.extract_strided_slice %400 {offsets = [0, 32], sizes = [8, 32], strides = [1, 1]} : vector<8x128xf32> to vector<8x32xf32>
    %408 = arith.negf %407 : vector<8x32xf32>
    %409 = math.exp %408 : vector<8x32xf32>
    %cst_123 = arith.constant 1.000000e+00 : f32
    %410 = vector.broadcast %cst_123 : f32 to vector<8x32xf32>
    %411 = arith.addf %410, %409 : vector<8x32xf32>
    %412 = arith.divf %410, %411 : vector<8x32xf32>
    %413 = vector.extract_strided_slice %400 {offsets = [0, 64], sizes = [8, 32], strides = [1, 1]} : vector<8x128xf32> to vector<8x32xf32>
    %414 = math.tanh %413 : vector<8x32xf32>
    %415 = vector.extract_strided_slice %400 {offsets = [0, 96], sizes = [8, 32], strides = [1, 1]} : vector<8x128xf32> to vector<8x32xf32>
    %416 = arith.negf %415 : vector<8x32xf32>
    %417 = math.exp %416 : vector<8x32xf32>
    %cst_124 = arith.constant 1.000000e+00 : f32
    %418 = vector.broadcast %cst_124 : f32 to vector<8x32xf32>
    %419 = arith.addf %418, %417 : vector<8x32xf32>
    %420 = arith.divf %418, %419 : vector<8x32xf32>
    %421 = arith.mulf %412, %394 : vector<8x32xf32>
    %422 = arith.mulf %406, %414 : vector<8x32xf32>
    %423 = arith.addf %421, %422 : vector<8x32xf32>
    %424 = math.tanh %423 : vector<8x32xf32>
    %425 = arith.mulf %420, %424 : vector<8x32xf32>
    %c0_125 = arith.constant 0 : index
    %c160 = arith.constant 160 : index
    %426 = vector.load %arg12[%c0_125, %c160] : memref<8x256xf32, #tpu.memory_space<vmem>>, vector<8x32xf32>
    tpu.vector_store %arg12[%c0_125, %c160], %425 {strides = array<i32>} : memref<8x256xf32, #tpu.memory_space<vmem>>, vector<8x32xf32>,
    %c48_126 = arith.constant 48 : index
    %c0_127 = arith.constant 0 : index
    %427 = vector.load %arg11[%c48_126, %c0_127] : memref<64x128xf32, #tpu.memory_space<vmem>>, vector<8x128xf32>
    %cst_128 = arith.constant dense<0.000000e+00> : vector<8x128xf32>
    %428 = tpu.matmul %425, %244, %cst_128 {dimension_numbers = #tpu.dot_dimension_numbers<[1], [0], [0], [1], [0, 0, 1, 1], [], []>} : vector<8x32xf32>, vector<32x128xf32>, vector<8x128xf32> -> vector<8x128xf32>
    %429 = arith.addf %427, %428 : vector<8x128xf32>
    %430 = vector.extract_strided_slice %429 {offsets = [0, 0], sizes = [8, 32], strides = [1, 1]} : vector<8x128xf32> to vector<8x32xf32>
    %431 = arith.negf %430 : vector<8x32xf32>
    %432 = math.exp %431 : vector<8x32xf32>
    %cst_129 = arith.constant 1.000000e+00 : f32
    %433 = vector.broadcast %cst_129 : f32 to vector<8x32xf32>
    %434 = arith.addf %433, %432 : vector<8x32xf32>
    %435 = arith.divf %433, %434 : vector<8x32xf32>
    %436 = vector.extract_strided_slice %429 {offsets = [0, 32], sizes = [8, 32], strides = [1, 1]} : vector<8x128xf32> to vector<8x32xf32>
    %437 = arith.negf %436 : vector<8x32xf32>
    %438 = math.exp %437 : vector<8x32xf32>
    %cst_130 = arith.constant 1.000000e+00 : f32
    %439 = vector.broadcast %cst_130 : f32 to vector<8x32xf32>
    %440 = arith.addf %439, %438 : vector<8x32xf32>
    %441 = arith.divf %439, %440 : vector<8x32xf32>
    %442 = vector.extract_strided_slice %429 {offsets = [0, 64], sizes = [8, 32], strides = [1, 1]} : vector<8x128xf32> to vector<8x32xf32>
    %443 = math.tanh %442 : vector<8x32xf32>
    %444 = vector.extract_strided_slice %429 {offsets = [0, 96], sizes = [8, 32], strides = [1, 1]} : vector<8x128xf32> to vector<8x32xf32>
    %445 = arith.negf %444 : vector<8x32xf32>
    %446 = math.exp %445 : vector<8x32xf32>
    %cst_131 = arith.constant 1.000000e+00 : f32
    %447 = vector.broadcast %cst_131 : f32 to vector<8x32xf32>
    %448 = arith.addf %447, %446 : vector<8x32xf32>
    %449 = arith.divf %447, %448 : vector<8x32xf32>
    %450 = arith.mulf %441, %423 : vector<8x32xf32>
    %451 = arith.mulf %435, %443 : vector<8x32xf32>
    %452 = arith.addf %450, %451 : vector<8x32xf32>
    %453 = math.tanh %452 : vector<8x32xf32>
    %454 = arith.mulf %449, %453 : vector<8x32xf32>
    %c0_132 = arith.constant 0 : index
    %c192 = arith.constant 192 : index
    %455 = vector.load %arg12[%c0_132, %c192] : memref<8x256xf32, #tpu.memory_space<vmem>>, vector<8x32xf32>
    tpu.vector_store %arg12[%c0_132, %c192], %454 {strides = array<i32>} : memref<8x256xf32, #tpu.memory_space<vmem>>, vector<8x32xf32>,
    %c56_133 = arith.constant 56 : index
    %c0_134 = arith.constant 0 : index
    %456 = vector.load %arg11[%c56_133, %c0_134] : memref<64x128xf32, #tpu.memory_space<vmem>>, vector<8x128xf32>
    %cst_135 = arith.constant dense<0.000000e+00> : vector<8x128xf32>
    %457 = tpu.matmul %454, %244, %cst_135 {dimension_numbers = #tpu.dot_dimension_numbers<[1], [0], [0], [1], [0, 0, 1, 1], [], []>} : vector<8x32xf32>, vector<32x128xf32>, vector<8x128xf32> -> vector<8x128xf32>
    %458 = arith.addf %456, %457 : vector<8x128xf32>
    %459 = vector.extract_strided_slice %458 {offsets = [0, 0], sizes = [8, 32], strides = [1, 1]} : vector<8x128xf32> to vector<8x32xf32>
    %460 = arith.negf %459 : vector<8x32xf32>
    %461 = math.exp %460 : vector<8x32xf32>
    %cst_136 = arith.constant 1.000000e+00 : f32
    %462 = vector.broadcast %cst_136 : f32 to vector<8x32xf32>
    %463 = arith.addf %462, %461 : vector<8x32xf32>
    %464 = arith.divf %462, %463 : vector<8x32xf32>
    %465 = vector.extract_strided_slice %458 {offsets = [0, 32], sizes = [8, 32], strides = [1, 1]} : vector<8x128xf32> to vector<8x32xf32>
    %466 = arith.negf %465 : vector<8x32xf32>
    %467 = math.exp %466 : vector<8x32xf32>
    %cst_137 = arith.constant 1.000000e+00 : f32
    %468 = vector.broadcast %cst_137 : f32 to vector<8x32xf32>
    %469 = arith.addf %468, %467 : vector<8x32xf32>
    %470 = arith.divf %468, %469 : vector<8x32xf32>
    %471 = vector.extract_strided_slice %458 {offsets = [0, 64], sizes = [8, 32], strides = [1, 1]} : vector<8x128xf32> to vector<8x32xf32>
    %472 = math.tanh %471 : vector<8x32xf32>
    %473 = vector.extract_strided_slice %458 {offsets = [0, 96], sizes = [8, 32], strides = [1, 1]} : vector<8x128xf32> to vector<8x32xf32>
    %474 = arith.negf %473 : vector<8x32xf32>
    %475 = math.exp %474 : vector<8x32xf32>
    %cst_138 = arith.constant 1.000000e+00 : f32
    %476 = vector.broadcast %cst_138 : f32 to vector<8x32xf32>
    %477 = arith.addf %476, %475 : vector<8x32xf32>
    %478 = arith.divf %476, %477 : vector<8x32xf32>
    %479 = arith.mulf %470, %452 : vector<8x32xf32>
    %480 = arith.mulf %464, %472 : vector<8x32xf32>
    %481 = arith.addf %479, %480 : vector<8x32xf32>
    %482 = math.tanh %481 : vector<8x32xf32>
    %483 = arith.mulf %478, %482 : vector<8x32xf32>
    %c0_139 = arith.constant 0 : index
    %c224 = arith.constant 224 : index
    %484 = vector.load %arg12[%c0_139, %c224] : memref<8x256xf32, #tpu.memory_space<vmem>>, vector<8x32xf32>
    tpu.vector_store %arg12[%c0_139, %c224], %483 {strides = array<i32>} : memref<8x256xf32, #tpu.memory_space<vmem>>, vector<8x32xf32>,
    %c0_140 = arith.constant 0 : index
    %c0_141 = arith.constant 0 : index
    %485 = vector.load %arg12[%c0_140, %c0_141] : memref<8x256xf32, #tpu.memory_space<vmem>>, vector<8x256xf32>
    %c0_142 = arith.constant 0 : index
    %c0_143 = arith.constant 0 : index
    %486 = vector.load %arg8[%c0_142, %c0_143] : memref<256x128xf32, #tpu.memory_space<vmem>>, vector<256x128xf32>
    %cst_144 = arith.constant dense<0.000000e+00> : vector<8x128xf32>
    %487 = tpu.matmul %485, %486, %cst_144 {dimension_numbers = #tpu.dot_dimension_numbers<[1], [0], [0], [1], [0, 0, 1, 1], [], []>} : vector<8x256xf32>, vector<256x128xf32>, vector<8x128xf32> -> vector<8x128xf32>
    %c0_145 = arith.constant 0 : index
    %c0_146 = arith.constant 0 : index
    %488 = vector.load %arg9[%c0_145, %c0_146] : memref<1x128xf32, #tpu.memory_space<vmem>>, vector<1x128xf32>
    %489 = vector.broadcast %488 : vector<1x128xf32> to vector<8x128xf32>
    %490 = arith.addf %487, %489 : vector<8x128xf32>
    %c0_147 = arith.constant 0 : index
    %c0_148 = arith.constant 0 : index
    %491 = vector.load %arg10[%c0_147, %c0_148] : memref<8x128xf32, #tpu.memory_space<vmem>>, vector<8x128xf32>
    tpu.vector_store %arg10[%c0_147, %c0_148], %490 {strides = array<i32>} : memref<8x128xf32, #tpu.memory_space<vmem>>, vector<8x128xf32>,
    return
  }
  func.func @transform_0(%arg0: i32) -> (i32, i32, i32) {
    %c0_i32 = arith.constant 0 : i32
    %c0_i32_0 = arith.constant 0 : i32
    %c0_i32_1 = arith.constant 0 : i32
    return %arg0, %c0_i32, %c0_i32_0 : i32, i32, i32
  }
  func.func @transform_1(%arg0: i32) -> (i32, i32) {
    %c0_i32 = arith.constant 0 : i32
    %c0_i32_0 = arith.constant 0 : i32
    %c0_i32_1 = arith.constant 0 : i32
    return %c0_i32, %c0_i32_0 : i32, i32
  }
  func.func @transform_2(%arg0: i32) -> (i32, i32) {
    %c0_i32 = arith.constant 0 : i32
    %c0_i32_0 = arith.constant 0 : i32
    %c0_i32_1 = arith.constant 0 : i32
    return %c0_i32, %c0_i32_0 : i32, i32
  }
  func.func @transform_3(%arg0: i32) -> (i32, i32) {
    %c0_i32 = arith.constant 0 : i32
    %c0_i32_0 = arith.constant 0 : i32
    %c0_i32_1 = arith.constant 0 : i32
    return %c0_i32, %c0_i32_0 : i32, i32
  }
  func.func @transform_4(%arg0: i32) -> (i32, i32) {
    %c0_i32 = arith.constant 0 : i32
    %c0_i32_0 = arith.constant 0 : i32
    %c0_i32_1 = arith.constant 0 : i32
    return %c0_i32, %c0_i32_0 : i32, i32
  }
  func.func @transform_5(%arg0: i32) -> (i32, i32) {
    %c0_i32 = arith.constant 0 : i32
    %c0_i32_0 = arith.constant 0 : i32
    %c0_i32_1 = arith.constant 0 : i32
    return %c0_i32, %c0_i32_0 : i32, i32
  }
  func.func @transform_6(%arg0: i32) -> (i32, i32) {
    %c0_i32 = arith.constant 0 : i32
    %c0_i32_0 = arith.constant 0 : i32
    %c0_i32_1 = arith.constant 0 : i32
    return %c0_i32, %c0_i32_0 : i32, i32
  }
  func.func @transform_7(%arg0: i32) -> (i32, i32) {
    %c0_i32 = arith.constant 0 : i32
    %c0_i32_0 = arith.constant 0 : i32
    %c0_i32_1 = arith.constant 0 : i32
    return %c0_i32, %c0_i32_0 : i32, i32
  }
  func.func @transform_8(%arg0: i32) -> (i32, i32) {
    %c0_i32 = arith.constant 0 : i32
    %c0_i32_0 = arith.constant 0 : i32
    %c0_i32_1 = arith.constant 0 : i32
    return %c0_i32, %c0_i32_0 : i32, i32
  }
  func.func @transform_9(%arg0: i32) -> (i32, i32) {
    %c0_i32 = arith.constant 0 : i32
    %c0_i32_0 = arith.constant 0 : i32
    return %arg0, %c0_i32 : i32, i32
  }
}

</mosaic_0001>

<bundles_post_ra>
// kernel: tpu_custom_call.1
= control target key start
LH: loop header
LB: loop body
LE: loop exit
PB: predicated region body
PF: predicated region fallthrough
CT: control target
= control target key end

     0   :  { %14 = vsyncpa [#allocation6], 0  ;;  %s3383_s0 = inlined_call_operand.vmem [shape: f32[1,64,32], index: 0, kind: input, shape index: {}]   ;;  %s3384_s1 = inlined_call_operand.vmem [shape: f32[32,128], index: 1, kind: input, shape index: {}]   ;;  %s3385_s2 = inlined_call_operand.vmem [shape: f32[32,128], index: 2, kind: input, shape index: {}]   ;;  %s3386_s3 = inlined_call_operand.vmem [shape: f32[1,128], index: 3, kind: input, shape index: {}]   ;;  %s3387_s4 = inlined_call_operand.vmem [shape: f32[32,128], index: 4, kind: input, shape index: {}]   ;;  %s3388_s5 = inlined_call_operand.hbm [shape: f32[32,128], index: 5, kind: input, shape index: {}]   ;;  %s3389_s6 = inlined_call_operand.vmem [shape: f32[1,128], index: 6, kind: input, shape index: {}]   ;;  %s3390_s7 = inlined_call_operand.hbm [shape: f32[256,128], index: 7, kind: input, shape index: {}]   ;;  %s3391_s8 = inlined_call_operand.vmem [shape: f32[1,128], index: 8, kind: input, shape index: {}]   ;;  %s3392_s9 = inlined_call_operand.hbm [shape: f32[8,128], index: 9, kind: output, shape index: {}]  }
   0x1   :  { %15 = vsyncpa [#allocation9], 0 }
   0x2   :  { %16 = vsyncpa [#allocation7], 0  ;;  %s2922_s30 = smov [#allocation5]   ;;  %s2850_s13 = scalar_lea.hbm %s3388_s5, 512 }
   0x3   :  { %s32_s10 = sshll.u32 %s2922_s30, 4  ;;  %p2851_p0 = scmp.ne.s32.totalorder %s3388_s5, %s2850_s13  ;;  %s33_s10 = int_to_ptr.vmem [resolvable:$true] %s32_s10 }
   0x4   :  { %p2854_p1 = scmp.lt.u32.totalorder %s2850_s13, %s3388_s5 }
   0x6   :  { %p2856_p2 = pnand %p2854_p1, %p2851_p0 }
   0x8   :  { %2859 = shalt.err (!%p2856_p2)
}
   0x9   :  { %s2860_s18 = scalar_lea.vmem %s33_s10, 512  ;;  %p2865_p4 = scmp.lt.s32.totalorder %s33_s10, %s33_s10 }
   0xa   :  { %p2861_p3 = scmp.ne.s32.totalorder %s33_s10, %s2860_s18  ;;  %p2866_p5 = scmp.lt.s32.totalorder %s2860_s18, %s2860_s18 }
   0xc   :  { %p2867_p6 = por %p2866_p5, %p2865_p4 }
   0xe   :  { %p2868_p7 = pnand %p2867_p6, %p2861_p3 }
  0x10   :  { %2871 = shalt.err (!%p2868_p7)
}
  0x11   :  { %s2923_s19 = smov 128   ;;  %s2924_s20 = smov 8  }
  0x12   :  { %38 = dma.hbm_to_vmem [thread:$0]  %s3388_s5, 512, %s33_s10, [#allocation6], %s2923_s19, %s2923_s19, %s2924_s20  }
  0x13   :  { %s2925_s23 = smov [#allocation8]   ;;  %s2872_s27 = scalar_lea.hbm %s3390_s7, 4096 }
  0x14   :  { %s46_s24 = sshll.u32 %s2925_s23, 4  ;;  %p2873_p8 = scmp.ne.s32.totalorder %s3390_s7, %s2872_s27  ;;  %s47_s24 = int_to_ptr.vmem [resolvable:$true] %s46_s24 }
  0x15   :  { %p2876_p9 = scmp.lt.u32.totalorder %s2872_s27, %s3390_s7 }
  0x17   :  { %p2878_p10 = pnand %p2876_p9, %p2873_p8 }
  0x19   :  { %2881 = shalt.err (!%p2878_p10)
}
  0x1a   :  { %s2882_s12 = scalar_lea.vmem %s47_s24, 4096  ;;  %p2887_p12 = scmp.lt.s32.totalorder %s47_s24, %s47_s24 }
  0x1b   :  { %p2883_p11 = scmp.ne.s32.totalorder %s47_s24, %s2882_s12  ;;  %p2888_p13 = scmp.lt.s32.totalorder %s2882_s12, %s2882_s12 }
  0x1d   :  { %p2889_p0 = por %p2888_p13, %p2887_p12 }
  0x1f   :  { %p2890_p1 = pnand %p2889_p0, %p2883_p11 }
  0x21   :  { %2893 = shalt.err (!%p2890_p1)
}
  0x22   :  { %52 = dma.hbm_to_vmem [thread:$0]  %s3390_s7, 4096, %s47_s24, [#allocation9], %s2923_s19, %s2923_s19, %s2924_s20  }
  0x23   :  { %2916 = dma.done.wait [#allocation6], 512  }
  0x24   :  { %2917 = vsyncadd [#allocation6], 4294966784 }
  0x25   :  { %2918 = dma.done.wait [#allocation9], 4096  }
  0x26   :  { %2919 = vsyncadd [#allocation9], 4294963200  ;;  %v2926_v0 = vmov 0.0|0.0   ;;  %vm2927_vm0 = vmmov 0   ;;  %v2928_v1 = vmov 0.0   ;;  %vm84_vm1 = vcmask 261120  }
  0x27   :  { %2587 = vmatprep.subr.bf16.mxu0 %v2926_v0  ;;  %2401 = vmatprep.mubr.msk.f32.mxu0 %vm2927_vm0, %v2928_v1  ;;  %v61_v2 = vld [vmem:[%s3384_s1] sm:$0xff]  ;;  %v62_v3 = vld [vmem:[%s3384_s1 + $0x8] sm:$0xff]  ;;  %v63_v4 = vld [vmem:[%s3384_s1 + $0x10] sm:$0xff]  ;;  %s2930_s20 = smov 32   ;;  %vm1410_vm2 = vcmask 523520   ;;  %vm1516_vm3 = vcmask 785920  }
  0x28   :  { %v2567_v5 = vpack.c.bf16 %v62_v3, %v61_v2  ;;  %v64_v6 = vld [vmem:[%s3384_s1 + $0x18] sm:$0xff]  ;;  %v70_v7 = vld [vmem:[%s3383_s0] sm:$0xff]  ;;  %v66_v10 = vld [vmem:[%s3385_s2 + $0x8] sm:$0xff]  ;;  %vm1618_vm4 = vcmask 1048320   ;;  %s2932_s11 = smov [#allocation10]  }
  0x29   :  { %v2571_v8 = vpack.c.bf16 %v64_v6, %v63_v4  ;;  %2359 = vmatprep.mubr.msk.f32.mxu1 %vm84_vm1, %v70_v7  ;;  %v65_v9 = vld [vmem:[%s3385_s2] sm:$0xff]  ;;  %v67_v12 = vld [vmem:[%s3385_s2 + $0x10] sm:$0xff]  ;;  %v68_v13 = vld [vmem:[%s3385_s2 + $0x18] sm:$0xff]  ;;  %s2153_s12 = sshll.u32 %s2932_s11, 4  ;;  %s2154_s12 = int_to_ptr.vmem [resolvable:$true] %s2153_s12 }
  0x2a   :  { %2568 = vmatprep.subr.bf16.mxu1 %v2567_v5  ;;  %v3032_v11 = vpack.c.bf16 %v66_v10, %v65_v9  ;;  %v3042_v14 = vpack.c.bf16 %v68_v13, %v67_v12  ;;  %v71_v15 = vld [vmem:[%s3383_s0 + $0x8] sm:$0xff]  ;;  %v72_v16 = vld [vmem:[%s3383_s0 + $0x10] sm:$0xff]  ;;  %v73_v17 = vld [vmem:[%s3383_s0 + $0x18] sm:$0xff]  ;;  %s2894_s2 = scalar_lea.vmem %s2154_s12, 128  ;;  %p2899_p3 = scmp.lt.s32.totalorder %s2154_s12, %s2154_s12 }
  0x2b   :  { %2570 = vmatpush3.bf16.msra.mxu1 %v2567_v5  ;;  %v74_v18 = vld [vmem:[%s3383_s0 + $0x20] sm:$0xff]  ;;  %v75_v19 = vld [vmem:[%s3383_s0 + $0x28] sm:$0xff]  ;;  %v76_v20 = vld [vmem:[%s3383_s0 + $0x30] sm:$0xff]  ;;  %p2895_p2 = scmp.ne.s32.totalorder %s2154_s12, %s2894_s2  ;;  %p2900_p4 = scmp.lt.s32.totalorder %s2894_s2, %s2894_s2 }
  0x2c   :  { %2572 = vmatprep.subr.bf16.mxu1 %v2571_v8  ;;  %2589 = vmatpush3.bf16.msra.mxu0 %v3032_v11  ;;  %v77_v21 = vld [vmem:[%s3383_s0 + $0x38] sm:$0xff]  ;;  %v2163_v22 = vld [vmem:[%s3386_s3] ss:$0 sm:$0xff]  ;;  %s2929_s3 = smov 64  }
  0x2d   :  { %2590 = vmatprep.subr.bf16.mxu0 %v2926_v0  ;;  %p2901_p5 = por %p2900_p4, %p2899_p3 }
  0x2f   :  { %2574 = vmatpush3.bf16.msra.mxu1 %v2571_v8  ;;  %p2902_p6 = pnand %p2901_p5, %p2895_p2 }
  0x30   :  { %2575 = vmatprep.subr.bf16.mxu1 %v2926_v0  ;;  %2592 = vmatpush3.bf16.msra.mxu0 %v3042_v14 }
  0x31   :  { %2599 = vmatprep.subr.bf16.mxu0 %v2926_v0 }
  0x32   :  { %2360 = vmatmul.mubr.msk.f32.vlgmr.msra.gmra.mrb[0].mxu1 %vm84_vm1, %v71_v15 }
  0x33   :  { %2577 = vmatpush3.bf16.msra.mxu1 %v3032_v11  ;;  %2362 = vmatprep.mubr.msk.f32.mxu1 %vm84_vm1, %v72_v16 }
  0x34   :  { %2578 = vmatprep.subr.bf16.mxu1 %v2926_v0 }
  0x36   :  { %2363 = vmatmul.mubr.msk.f32.gmra.mrb[2].mxu1 %vm84_vm1, %v73_v17 }
  0x37   :  { %2365 = vmatprep.mubr.msk.f32.mxu1 %vm84_vm1, %v74_v18  ;;  %2580 = vmatpush3.bf16.msra.mxu1 %v3042_v14 }
  0x38   :  { %2581 = vmatprep.subr.bf16.mxu1 %v2926_v0 }
  0x3a   :  { %2366 = vmatmul.mubr.msk.f32.gmra.mrb[4].mxu1 %vm84_vm1, %v75_v19 }
  0x3b   :  { %2368 = vmatprep.mubr.msk.f32.mxu1 %vm84_vm1, %v76_v20 }
  0x3e   :  { %2369 = vmatmul.mubr.msk.f32.gmra.mrb[6].mxu1 %vm84_vm1, %v77_v21 }
  0x3f   :  { %2379 = vmatprep.mubr.msk.f32.mxu1 %vm2927_vm0, %v2928_v1 }
  0x42   :  { %2380 = vmatmul.mubr.f32.vlgmr.msra.gmra.mrb[8].mxu1 %v2928_v1 }
  0x43   :  { %2583 = vmatpush3.bf16.msra.mxu1 %v3032_v11  ;;  %2390 = vmatprep.mubr.msk.f32.mxu1 %vm2927_vm0, %v2928_v1 }
  0x44   :  { %2584 = vmatprep.subr.bf16.mxu1 %v2926_v0 }
  0x47   :  { %2586 = vmatpush3.bf16.msra.mxu1 %v3042_v14 }
  0x48   :  { %2593 = vmatprep.subr.bf16.mxu1 %v2926_v0 }
 0x105   :  { %v2361_v23 = vpop.f32.mrb[0].mxu1 }
 0x106   :  { %v181_v24 = vadd.f32 %v2361_v23, %v2163_v22  ;;  %v175_v25 = vpop.f32.mrb[1].mxu1 }
 0x107   :  { %v176_v38 = vadd.f32 %v2163_v22, %v175_v25 }
 0x109   :  { %v2364_v26 = vpop.f32.mrb[2].mxu1 }
 0x10a   :  { %v3091_v27 = vadd.f32 %v2364_v26, %v2163_v22  ;;  %v185_v28 = vpop.f32.mrb[3].mxu1 }
 0x10b   :  { %v3093_v29 = vadd.f32 %v2163_v22, %v185_v28 }
 0x10d   :  { %v2367_v30 = vpop.f32.mrb[4].mxu1 }
 0x10e   :  { %v3095_v31 = vadd.f32 %v2367_v30, %v2163_v22  ;;  %v195_v32 = vpop.f32.mrb[5].mxu1 }
 0x10f   :  { %v3097_v33 = vadd.f32 %v2163_v22, %v195_v32 }
 0x111   :  { %v2370_v34 = vpop.f32.mrb[6].mxu1 }
 0x112   :  { %v3099_v35 = vadd.f32 %v2370_v34, %v2163_v22  ;;  %v205_v36 = vpop.f32.mrb[7].mxu1 }
 0x113   :  { %v3101_v37 = vadd.f32 %v2163_v22, %v205_v36 }
 0x115   :  { %v292_v39 = vpop.f32.mrb[8].mxu1 }
 0x116   :  { %v296_v40 = vadd.f32 %v292_v39, %v176_v38  ;;  %v2381_v41 = vpop.f32.mrb[9].mxu1 }
 0x118   :  { %2722 = vtanh.f32 %v296_v40  ;;  %v2172_v43 = vmul.f32 -1.442695, %v296_v40 }
 0x11a   :  { %2724 = vpow2.f32 %v2172_v43 }
 0x122   :  { %v2723_v42 = vpop.eup %2722 }
 0x123   :  { %306 = vrot.lane.b32.xlu0 %v2723_v42, %s2929_s3 }
 0x124   :  { %v2725_v44 = vpop.eup %2724 }
 0x125   :  { %v300_v45 = vadd.f32 1.0, %v2725_v44 }
 0x127   :  { %2726 = vrcp.f32 %v300_v45 }
 0x131   :  { %v2727_v46 = vpop.eup %2726 }
 0x132   :  { %v304_v49 = vmul.f32 0.0, %v2727_v46 }
 0x195   :  { %v307_v47 = vpop.permute.xlu0 %306 }
 0x196   :  { %v309_v48 = vmul.f32 %v2727_v46, %v307_v47 }
 0x198   :  { %311 = vrot.lane.b32.xlu0 %v309_v48, %s2930_s20 }
 0x20a   :  { %v312_v50 = vpop.permute.xlu0 %311 }
 0x20b   :  { %v314_v51 = vadd.f32 %v312_v50, %v304_v49 }
 0x20d   :  { %2728 = vtanh.f32 %v314_v51 }
 0x217   :  { %v2729_v52 = vpop.eup %2728 }
 0x218   :  { %317 = vrot.lane.b32.xlu1 %v2729_v52, %s2929_s3 }
 0x28a   :  { %v318_v53 = vpop.permute.xlu1 %317 }
 0x28b   :  { %v320_v54 = vmul.f32 %v2727_v46, %v318_v53 }
 0x28d   :  { %322 = vrot.lane.b32.xlu1 %v320_v54, %s2930_s20 }
 0x2ff   :  { %v323_v55 = vpop.permute.xlu1 %322 }
 0x300   :  { %325 = vst.msk [vmem:[#allocation4] sm:$0xff] %vm84_vm1, %v323_v55  ;;  %2391 = vmatmul.mubr.msk.f32.vlgmr.msra.gmra.mrb[10].mxu1 %vm84_vm1, %v323_v55 }
 0x301   :  { %2595 = vmatpush3.bf16.msra.mxu1 %v3032_v11  ;;  %2412 = vmatprep.mubr.msk.f32.mxu1 %vm2927_vm0, %v2928_v1 }
 0x302   :  { %2596 = vmatprep.subr.bf16.mxu1 %v2926_v0 }
 0x305   :  { %2598 = vmatpush3.bf16.msra.mxu1 %v3042_v14 }
 0x306   :  { %2605 = vmatprep.subr.bf16.mxu1 %v2926_v0 }
 0x3d3   :  { %v395_v56 = vpop.f32.mrb[10].mxu1 }
 0x3d4   :  { %v399_v57 = vadd.f32 %v395_v56, %v181_v24  ;;  %v2392_v58 = vpop.f32.mrb[11].mxu1 }
 0x3d6   :  { %2730 = vtanh.f32 %v399_v57  ;;  %v2174_v60 = vmul.f32 -1.442695, %v399_v57 }
 0x3d8   :  { %2732 = vpow2.f32 %v2174_v60 }
 0x3e0   :  { %v2731_v59 = vpop.eup %2730 }
 0x3e1   :  { %409 = vrot.lane.b32.xlu0 %v2731_v59, %s2929_s3 }
 0x3e2   :  { %v2733_v61 = vpop.eup %2732 }
 0x3e3   :  { %v403_v62 = vadd.f32 1.0, %v2733_v61 }
 0x3e5   :  { %2734 = vrcp.f32 %v403_v62 }
 0x3ef   :  { %v2735_v63 = vpop.eup %2734 }
 0x3f0   :  { %v407_v4 = vmul.f32 %v2735_v63, %v314_v51 }
 0x453   :  { %v410_v2 = vpop.permute.xlu0 %409 }
 0x454   :  { %v412_v3 = vmul.f32 %v2735_v63, %v410_v2 }
 0x456   :  { %414 = vrot.lane.b32.xlu1 %v412_v3, %s2930_s20 }
 0x4c8   :  { %v415_v5 = vpop.permute.xlu1 %414 }
 0x4c9   :  { %v417_v6 = vadd.f32 %v415_v5, %v407_v4 }
 0x4cb   :  { %2736 = vtanh.f32 %v417_v6 }
 0x4d5   :  { %v2737_v7 = vpop.eup %2736 }
 0x4d6   :  { %420 = vrot.lane.b32.xlu0 %v2737_v7, %s2929_s3 }
 0x548   :  { %v421_v8 = vpop.permute.xlu0 %420 }
 0x549   :  { %v423_v9 = vmul.f32 %v2735_v63, %v421_v8 }
 0x54b   :  { %425 = vrot.lane.b32.xlu1 %v423_v9, %s2930_s20 }
 0x5bd   :  { %v426_v10 = vpop.permute.xlu1 %425 }
 0x5be   :  { %428 = vst.msk [vmem:[#allocation4 + $0x8] sm:$0xff] %vm84_vm1, %v426_v10  ;;  %2402 = vmatmul.mubr.msk.f32.vlgmr.msra.gmra.mrb[0].mxu0 %vm84_vm1, %v426_v10 }
 0x5bf   :  { %2601 = vmatpush3.bf16.msra.mxu0 %v3032_v11  ;;  %2423 = vmatprep.mubr.msk.f32.mxu0 %vm2927_vm0, %v2928_v1 }
 0x5c0   :  { %2602 = vmatprep.subr.bf16.mxu0 %v2926_v0 }
 0x5c3   :  { %2604 = vmatpush3.bf16.msra.mxu0 %v3042_v14 }
 0x5c4   :  { %2611 = vmatprep.subr.bf16.mxu0 %v2926_v0 }
 0x691   :  { %v498_v12 = vpop.f32.mrb[0].mxu0 }
 0x692   :  { %v502_v13 = vadd.f32 %v498_v12, %v3093_v29  ;;  %v2403_v15 = vpop.f32.mrb[1].mxu0 }
 0x694   :  { %2738 = vtanh.f32 %v502_v13  ;;  %v2176_v17 = vmul.f32 -1.442695, %v502_v13 }
 0x696   :  { %2740 = vpow2.f32 %v2176_v17 }
 0x69e   :  { %v2739_v16 = vpop.eup %2738 }
 0x69f   :  { %512 = vrot.lane.b32.xlu0 %v2739_v16, %s2929_s3 }
 0x6a0   :  { %v2741_v18 = vpop.eup %2740 }
 0x6a1   :  { %v506_v19 = vadd.f32 1.0, %v2741_v18  ;;  %v1048_v18 = vld [vmem:[%s3387_s4 + $0x8] sm:$0xff] }
 0x6a3   :  { %2742 = vrcp.f32 %v506_v19 }
 0x6ad   :  { %v2743_v20 = vpop.eup %2742 }
 0x6ae   :  { %v510_v23 = vmul.f32 %v2743_v20, %v417_v6 }
 0x711   :  { %v513_v21 = vpop.permute.xlu0 %512 }
 0x712   :  { %v515_v22 = vmul.f32 %v2743_v20, %v513_v21 }
 0x714   :  { %517 = vrot.lane.b32.xlu1 %v515_v22, %s2930_s20 }
 0x786   :  { %v518_v24 = vpop.permute.xlu1 %517 }
 0x787   :  { %v520_v25 = vadd.f32 %v518_v24, %v510_v23  ;;  %v1049_v23 = vld [vmem:[%s3387_s4 + $0x10] sm:$0xff]  ;;  %v1050_v24 = vld [vmem:[%s3387_s4 + $0x18] sm:$0xff] }
 0x789   :  { %2744 = vtanh.f32 %v520_v25 }
 0x793   :  { %v2745_v26 = vpop.eup %2744 }
 0x794   :  { %523 = vrot.lane.b32.xlu0 %v2745_v26, %s2929_s3 }
 0x806   :  { %v524_v28 = vpop.permute.xlu0 %523 }
 0x807   :  { %v526_v29 = vmul.f32 %v2743_v20, %v524_v28  ;;  %v1056_v28 = vld [vmem:[#allocation4] sm:$0xff] }
 0x809   :  { %528 = vrot.lane.b32.xlu1 %v526_v29, %s2930_s20  ;;  %v1057_v29 = vld [vmem:[#allocation4 + $0x8] sm:$0xff] }
 0x87b   :  { %v529_v30 = vpop.permute.xlu1 %528 }
 0x87c   :  { %531 = vst.msk [vmem:[#allocation4 + $0x10] sm:$0xff] %vm84_vm1, %v529_v30  ;;  %2413 = vmatmul.mubr.msk.f32.vlgmr.msra.gmra.mrb[12].mxu1 %vm84_vm1, %v529_v30 }
 0x87d   :  { %2607 = vmatpush3.bf16.msra.mxu1 %v3032_v11  ;;  %2434 = vmatprep.mubr.msk.f32.mxu1 %vm2927_vm0, %v2928_v1 }
 0x87e   :  { %2608 = vmatprep.subr.bf16.mxu1 %v2926_v0 }
 0x881   :  { %2610 = vmatpush3.bf16.msra.mxu1 %v3042_v14 }
 0x882   :  { %2617 = vmatprep.subr.bf16.mxu1 %v2926_v0 }
 0x883   :  { %v1058_v30 = vld [vmem:[#allocation4 + $0x10] sm:$0xff] }
 0x94f   :  { %v601_v32 = vpop.f32.mrb[12].mxu1 }
 0x950   :  { %v605_v34 = vadd.f32 %v601_v32, %v3091_v27  ;;  %v2414_v36 = vpop.f32.mrb[13].mxu1 }
 0x952   :  { %2746 = vtanh.f32 %v605_v34  ;;  %v2178_v39 = vmul.f32 -1.442695, %v605_v34 }
 0x954   :  { %2748 = vpow2.f32 %v2178_v39 }
 0x95c   :  { %v2747_v38 = vpop.eup %2746 }
 0x95d   :  { %615 = vrot.lane.b32.xlu0 %v2747_v38, %s2929_s3 }
 0x95e   :  { %v2749_v40 = vpop.eup %2748 }
 0x95f   :  { %v609_v41 = vadd.f32 1.0, %v2749_v40 }
 0x961   :  { %2750 = vrcp.f32 %v609_v41 }
 0x96b   :  { %v2751_v42 = vpop.eup %2750 }
 0x96c   :  { %v613_v45 = vmul.f32 %v2751_v42, %v520_v25  ;;  %v2627_v25 = vpack.c.bf16 %v1050_v24, %v1049_v23 }
 0x9cf   :  { %v616_v43 = vpop.permute.xlu0 %615 }
 0x9d0   :  { %v618_v44 = vmul.f32 %v2751_v42, %v616_v43 }
 0x9d2   :  { %620 = vrot.lane.b32.xlu1 %v618_v44, %s2930_s20 }
 0xa44   :  { %v621_v46 = vpop.permute.xlu1 %620 }
 0xa45   :  { %v623_v47 = vadd.f32 %v621_v46, %v613_v45 }
 0xa47   :  { %2752 = vtanh.f32 %v623_v47 }
 0xa51   :  { %v2753_v27 = vpop.eup %2752 }
 0xa52   :  { %626 = vrot.lane.b32.xlu0 %v2753_v27, %s2929_s3 }
 0xac4   :  { %v627_v48 = vpop.permute.xlu0 %626 }
 0xac5   :  { %v629_v49 = vmul.f32 %v2751_v42, %v627_v48 }
 0xac7   :  { %631 = vrot.lane.b32.xlu1 %v629_v49, %s2930_s20 }
 0xb39   :  { %v632_v50 = vpop.permute.xlu1 %631 }
 0xb3a   :  { %634 = vst.msk [vmem:[#allocation4 + $0x18] sm:$0xff] %vm84_vm1, %v632_v50  ;;  %2424 = vmatmul.mubr.msk.f32.vlgmr.msra.gmra.mrb[2].mxu0 %vm84_vm1, %v632_v50 }
 0xb3b   :  { %2613 = vmatpush3.bf16.msra.mxu0 %v3032_v11  ;;  %2445 = vmatprep.mubr.msk.f32.mxu0 %vm2927_vm0, %v2928_v1 }
 0xb3c   :  { %2614 = vmatprep.subr.bf16.mxu0 %v2926_v0 }
 0xb3f   :  { %2616 = vmatpush3.bf16.msra.mxu0 %v3042_v14 }
 0xb41   :  { %v1059_v32 = vld [vmem:[#allocation4 + $0x18] sm:$0xff] }
 0xc0d   :  { %v704_v51 = vpop.f32.mrb[2].mxu0 }
 0xc0e   :  { %v708_v52 = vadd.f32 %v704_v51, %v3097_v33  ;;  %v2425_v53 = vpop.f32.mrb[3].mxu0 }
 0xc10   :  { %2754 = vtanh.f32 %v708_v52  ;;  %v2180_v55 = vmul.f32 -1.442695, %v708_v52 }
 0xc12   :  { %2756 = vpow2.f32 %v2180_v55 }
 0xc1a   :  { %v2755_v54 = vpop.eup %2754 }
 0xc1b   :  { %718 = vrot.lane.b32.xlu0 %v2755_v54, %s2929_s3 }
 0xc1c   :  { %v2757_v56 = vpop.eup %2756 }
 0xc1d   :  { %v712_v57 = vadd.f32 1.0, %v2757_v56  ;;  %v1051_v56 = vld [vmem:[#allocation5] sm:$0xff] }
 0xc1f   :  { %2758 = vrcp.f32 %v712_v57  ;;  %v1052_v57 = vld [vmem:[#allocation5 + $0x8] sm:$0xff] }
 0xc29   :  { %v2759_v58 = vpop.eup %2758 }
 0xc2a   :  { %v716_v61 = vmul.f32 %v2759_v58, %v623_v47 }
 0xc8d   :  { %v719_v59 = vpop.permute.xlu0 %718 }
 0xc8e   :  { %v721_v60 = vmul.f32 %v2759_v58, %v719_v59  ;;  %v1053_v59 = vld [vmem:[#allocation5 + $0x10] sm:$0xff] }
 0xc90   :  { %723 = vrot.lane.b32.xlu1 %v721_v60, %s2930_s20  ;;  %v1054_v60 = vld [vmem:[#allocation5 + $0x18] sm:$0xff] }
 0xd02   :  { %v724_v62 = vpop.permute.xlu1 %723 }
 0xd03   :  { %v726_v63 = vadd.f32 %v724_v62, %v716_v61  ;;  %v3212_v61 = vpack.c.bf16 %v1054_v60, %v1053_v59 }
 0xd05   :  { %2760 = vtanh.f32 %v726_v63 }
 0xd0f   :  { %v2761_v33 = vpop.eup %2760 }
 0xd10   :  { %729 = vrot.lane.b32.xlu0 %v2761_v33, %s2929_s3 }
 0xd82   :  { %v730_v2 = vpop.permute.xlu0 %729 }
 0xd83   :  { %v732_v3 = vmul.f32 %v2759_v58, %v730_v2  ;;  %v3208_v58 = vpack.c.bf16 %v1052_v57, %v1051_v56 }
 0xd85   :  { %734 = vrot.lane.b32.xlu1 %v732_v3, %s2930_s20 }
 0xdf7   :  { %v735_v4 = vpop.permute.xlu1 %734 }
 0xdf8   :  { %737 = vst.msk [vmem:[#allocation4 + $0x20] sm:$0xff] %vm84_vm1, %v735_v4  ;;  %2435 = vmatmul.mubr.msk.f32.vlgmr.msra.gmra.mrb[14].mxu1 %vm84_vm1, %v735_v4 }
 0xdf9   :  { %2619 = vmatpush3.bf16.msra.mxu1 %v3032_v11  ;;  %2456 = vmatprep.mubr.msk.f32.mxu1 %vm2927_vm0, %v2928_v1 }
 0xdfa   :  { %2620 = vmatprep.subr.bf16.mxu1 %v2926_v0 }
 0xdfd   :  { %2622 = vmatpush3.bf16.msra.mxu1 %v3042_v14 }
 0xdfe   :  { %2631 = vmatprep.subr.bf16.mxu1 %v2926_v0 }
 0xdff   :  { %v1060_v34 = vld [vmem:[#allocation4 + $0x20] sm:$0xff] }
 0xecb   :  { %v807_v5 = vpop.f32.mrb[14].mxu1 }
 0xecc   :  { %v811_v6 = vadd.f32 %v807_v5, %v3095_v31  ;;  %v2436_v7 = vpop.f32.mrb[15].mxu1  ;;  %v1047_v31 = vld [vmem:[%s3387_s4] sm:$0xff] }
 0xecd   :  { %v2623_v19 = vpack.c.bf16 %v1048_v18, %v1047_v31 }
 0xece   :  { %2762 = vtanh.f32 %v811_v6  ;;  %v2182_v9 = vmul.f32 -1.442695, %v811_v6  ;;  %v3237_v6 = vld [vmem:[%s3389_s6] ss:$0 sm:$0xff]  ;;  %s2931_s6 = smov 96  }
 0xecf   :  { %2624 = vmatprep.subr.bf16.mxu0 %v2623_v19 }
 0xed0   :  { %2764 = vpow2.f32 %v2182_v9 }
 0xed8   :  { %v2763_v8 = vpop.eup %2762 }
 0xed9   :  { %821 = vrot.lane.b32.xlu0 %v2763_v8, %s2929_s3 }
 0xeda   :  { %v2765_v11 = vpop.eup %2764 }
 0xedb   :  { %v815_v10 = vadd.f32 1.0, %v2765_v11 }
 0xedd   :  { %2766 = vrcp.f32 %v815_v10 }
 0xee7   :  { %v2767_v12 = vpop.eup %2766 }
 0xee8   :  { %v819_v14 = vmul.f32 %v2767_v12, %v726_v63 }
 0xf4b   :  { %v822_v13 = vpop.permute.xlu0 %821 }
 0xf4c   :  { %v824_v15 = vmul.f32 %v2767_v12, %v822_v13 }
 0xf4e   :  { %826 = vrot.lane.b32.xlu1 %v824_v15, %s2930_s20 }
 0xfc0   :  { %v827_v16 = vpop.permute.xlu1 %826 }
 0xfc1   :  { %v829_v17 = vadd.f32 %v827_v16, %v819_v14 }
 0xfc3   :  { %2768 = vtanh.f32 %v829_v17 }
 0xfcd   :  { %v2769_v20 = vpop.eup %2768 }
 0xfce   :  { %832 = vrot.lane.b32.xlu0 %v2769_v20, %s2929_s3 }
0x1040   :  { %v833_v21 = vpop.permute.xlu0 %832 }
0x1041   :  { %v835_v22 = vmul.f32 %v2767_v12, %v833_v21 }
0x1043   :  { %837 = vrot.lane.b32.xlu1 %v835_v22, %s2930_s20 }
0x10b5   :  { %v838_v26 = vpop.permute.xlu1 %837 }
0x10b6   :  { %840 = vst.msk [vmem:[#allocation4 + $0x28] sm:$0xff] %vm84_vm1, %v838_v26  ;;  %2446 = vmatmul.mubr.msk.f32.vlgmr.msra.gmra.mrb[4].mxu0 %vm84_vm1, %v838_v26 }
0x10b7   :  { %2626 = vmatpush3.bf16.msra.mxu0 %v2623_v19  ;;  %2467 = vmatprep.mubr.msk.f32.mxu0 %vm84_vm1, %v1056_v28 }
0x10b8   :  { %2628 = vmatprep.subr.bf16.mxu0 %v2627_v25 }
0x10bb   :  { %2630 = vmatpush3.bf16.msra.mxu0 %v2627_v25 }
0x10bc   :  { %2643 = vmatprep.subr.bf16.mxu0 %v2926_v0 }
0x10bd   :  { %v1061_v36 = vld [vmem:[#allocation4 + $0x28] sm:$0xff] }
0x10be   :  { %2468 = vmatmul.mubr.msk.f32.vlgmr.msra.gmra.mrb[6].mxu0 %vm84_vm1, %v1057_v29 }
0x10bf   :  { %2470 = vmatprep.mubr.msk.f32.mxu0 %vm84_vm1, %v1058_v30  ;;  %2645 = vmatpush3.bf16.msra.mxu0 %v3208_v58 }
0x10c0   :  { %2646 = vmatprep.subr.bf16.mxu0 %v2926_v0 }
0x10c2   :  { %2471 = vmatmul.mubr.msk.f32.gmra.mrb[8].mxu0 %vm84_vm1, %v1059_v32 }
0x10c3   :  { %2473 = vmatprep.mubr.msk.f32.mxu0 %vm84_vm1, %v1060_v34  ;;  %2648 = vmatpush3.bf16.msra.mxu0 %v3212_v61 }
0x10c4   :  { %2655 = vmatprep.subr.bf16.mxu0 %v2926_v0 }
0x10c6   :  { %2474 = vmatmul.mubr.msk.f32.gmra.mrb[10].mxu0 %vm84_vm1, %v1061_v36 }
0x1189   :  { %v910_v38 = vpop.f32.mrb[4].mxu0 }
0x118a   :  { %v914_v39 = vadd.f32 %v910_v38, %v3101_v37  ;;  %v2447_v40 = vpop.f32.mrb[5].mxu0 }
0x118c   :  { %2770 = vtanh.f32 %v914_v39  ;;  %v2184_v27 = vmul.f32 -1.442695, %v914_v39 }
0x118e   :  { %2772 = vpow2.f32 %v2184_v27 }
0x1191   :  { %v3192_v41 = vpop.f32.mrb[6].mxu0 }
0x1192   :  { %v1160_v42 = vpop.f32.mrb[7].mxu0 }
0x1193   :  { %v1161_v7 = vadd.f32 %v3237_v6, %v1160_v42  ;;  %v1166_v42 = vadd.f32 %v3192_v41, %v3237_v6 }
0x1195   :  { %v3194_v43 = vpop.f32.mrb[8].mxu0 }
0x1196   :  { %v2771_v44 = vpop.eup %2770  ;;  %v3196_v45 = vpop.f32.mrb[9].mxu0 }
0x1197   :  { %924 = vrot.lane.b32.xlu0 %v2771_v44, %s2929_s3 }
0x1198   :  { %v2773_v48 = vpop.eup %2772 }
0x1199   :  { %v3199_v46 = vpop.f32.mrb[10].mxu0  ;;  %v918_v37 = vadd.f32 1.0, %v2773_v48 }
0x119a   :  { %v3201_v47 = vpop.f32.mrb[11].mxu0 }
0x119b   :  { %2774 = vrcp.f32 %v918_v37 }
0x11a5   :  { %v2775_v49 = vpop.eup %2774 }
0x11a6   :  { %v922_v52 = vmul.f32 %v2775_v49, %v829_v17 }
0x1209   :  { %v925_v50 = vpop.permute.xlu0 %924 }
0x120a   :  { %v927_v51 = vmul.f32 %v2775_v49, %v925_v50 }
0x120c   :  { %929 = vrot.lane.b32.xlu1 %v927_v51, %s2930_s20 }
0x127e   :  { %v930_v53 = vpop.permute.xlu1 %929 }
0x127f   :  { %v3204_v54 = vadd.f32 %v930_v53, %v922_v52 }
0x1281   :  { %2776 = vtanh.f32 %v3204_v54 }
0x128b   :  { %v2777_v55 = vpop.eup %2776 }
0x128c   :  { %935 = vrot.lane.b32.xlu0 %v2777_v55, %s2929_s3 }
0x12fe   :  { %v936_v62 = vpop.permute.xlu0 %935 }
0x12ff   :  { %v938_v63 = vmul.f32 %v2775_v49, %v936_v62 }
0x1301   :  { %940 = vrot.lane.b32.xlu1 %v938_v63, %s2930_s20 }
0x1373   :  { %v941_v33 = vpop.permute.xlu1 %940 }
0x1374   :  { %943 = vst.msk [vmem:[#allocation4 + $0x30] sm:$0xff] %vm84_vm1, %v941_v33  ;;  %2457 = vmatmul.mubr.msk.f32.vlgmr.msra.gmra.mrb[16].mxu1 %vm84_vm1, %v941_v33 }
0x1375   :  { %2633 = vmatpush3.bf16.msra.mxu1 %v3208_v58  ;;  %2487 = vmatprep.mubr.msk.f32.mxu1 %vm2927_vm0, %v2928_v1 }
0x1376   :  { %2634 = vmatprep.subr.bf16.mxu1 %v2926_v0 }
0x1379   :  { %2636 = vmatpush3.bf16.msra.mxu1 %v3212_v61 }
0x137a   :  { %2637 = vmatprep.subr.bf16.mxu1 %v2926_v0 }
0x137b   :  { %v1062_v2 = vld [vmem:[#allocation4 + $0x30] sm:$0xff] }
0x137c   :  { %2488 = vmatmul.mubr.f32.vlgmr.msra.gmra.mrb[18].mxu1 %v2928_v1  ;;  %2476 = vmatprep.mubr.msk.f32.mxu0 %vm84_vm1, %v1062_v2 }
0x137d   :  { %2639 = vmatpush3.bf16.msra.mxu1 %v3208_v58  ;;  %2498 = vmatprep.mubr.msk.f32.mxu1 %vm2927_vm0, %v2928_v1 }
0x137e   :  { %2640 = vmatprep.subr.bf16.mxu1 %v2926_v0 }
0x1381   :  { %2642 = vmatpush3.bf16.msra.mxu1 %v3212_v61 }
0x1382   :  { %2649 = vmatprep.subr.bf16.mxu1 %v2926_v0 }
0x1447   :  { %v1013_v3 = vpop.f32.mrb[16].mxu1 }
0x1448   :  { %v1017_v4 = vadd.f32 %v1013_v3, %v3099_v35  ;;  %v2458_v5 = vpop.f32.mrb[17].mxu1 }
0x144a   :  { %v2186_v21 = vmul.f32 -1.442695, %v1017_v4 }
0x144f   :  { %v1274_v8 = vpop.f32.mrb[18].mxu1 }
0x1450   :  { %v1278_v9 = vadd.f32 %v1274_v8, %v1161_v7  ;;  %v2489_v11 = vpop.f32.mrb[19].mxu1 }
0x1452   :  { %2778 = vtanh.f32 %v1278_v9  ;;  %v2196_v12 = vmul.f32 -1.442695, %v1278_v9 }
0x1454   :  { %2780 = vpow2.f32 %v2196_v12 }
0x145c   :  { %v2779_v10 = vpop.eup %2778 }
0x145d   :  { %1288 = vrot.lane.b32.xlu0 %v2779_v10, %s2929_s3 }
0x145e   :  { %v2781_v13 = vpop.eup %2780 }
0x145f   :  { %v1282_v15 = vadd.f32 1.0, %v2781_v13 }
0x1461   :  { %2782 = vrcp.f32 %v1282_v15 }
0x146b   :  { %v2783_v35 = vpop.eup %2782 }
0x146c   :  { %v1286_v17 = vmul.f32 0.0, %v2783_v35 }
0x14cf   :  { %v1289_v14 = vpop.permute.xlu0 %1288 }
0x14d0   :  { %v1291_v16 = vmul.f32 %v2783_v35, %v1289_v14 }
0x14d2   :  { %1293 = vrot.lane.b32.xlu1 %v1291_v16, %s2930_s20 }
0x1544   :  { %v1294_v31 = vpop.permute.xlu1 %1293 }
0x1545   :  { %v1296_v18 = vadd.f32 %v1294_v31, %v1286_v17 }
0x1547   :  { %2784 = vtanh.f32 %v1296_v18 }
0x1548   :  { %2786 = vtanh.f32 %v1017_v4  ;;  %v1171_v4 = vadd.f32 %v3237_v6, %v3196_v45 }
0x1549   :  { %2788 = vpow2.f32 %v2186_v21 }
0x1551   :  { %v2785_v19 = vpop.eup %2784 }
0x1552   :  { %1299 = vrot.lane.b32.xlu0 %v2785_v19, %s2929_s3  ;;  %v2787_v20 = vpop.eup %2786 }
0x1553   :  { %v2789_v22 = vpop.eup %2788 }
0x1554   :  { %v1021_v23 = vadd.f32 1.0, %v2789_v22 }
0x1556   :  { %1027 = vrot.lane.b32.xlu0 %v2787_v20, %s2929_s3  ;;  %2790 = vrcp.f32 %v1021_v23  ;;  %v1176_v20 = vadd.f32 %v3194_v43, %v3237_v6 }
0x1560   :  { %v2791_v26 = vpop.eup %2790 }
0x1561   :  { %v1025_v32 = vmul.f32 %v2791_v26, %v3204_v54 }
0x15c4   :  { %v1300_v24 = vpop.permute.xlu0 %1299 }
0x15c5   :  { %v1302_v25 = vmul.f32 %v2783_v35, %v1300_v24 }
0x15c7   :  { %1304 = vrot.lane.b32.xlu1 %v1302_v25, %s2930_s20 }
0x15c8   :  { %v1028_v28 = vpop.permute.xlu0 %1027 }
0x15c9   :  { %v1030_v29 = vmul.f32 %v2791_v26, %v1028_v28 }
0x15cb   :  { %1032 = vrot.lane.b32.xlu0 %v1030_v29, %s2930_s20 }
0x1639   :  { %v1305_v30 = vpop.permute.xlu1 %1304 }
0x163a   :  { %1307 = vst.msk [vmem:[#allocation3] sm:$0xff] %vm84_vm1, %v1305_v30  ;;  %2499 = vmatmul.mubr.msk.f32.vlgmr.msra.gmra.mrb[20].mxu1 %vm84_vm1, %v1305_v30 }
0x163b   :  { %2651 = vmatpush3.bf16.msra.mxu1 %v3208_v58  ;;  %2520 = vmatprep.mubr.msk.f32.mxu1 %vm2927_vm0, %v2928_v1 }
0x163c   :  { %2652 = vmatprep.subr.bf16.mxu1 %v2926_v0 }
0x163d   :  { %v1033_v34 = vpop.permute.xlu0 %1032 }
0x163e   :  { %v1035_v36 = vadd.f32 %v1033_v34, %v1025_v32 }
0x163f   :  { %2654 = vmatpush3.bf16.msra.mxu1 %v3212_v61 }
0x1640   :  { %2792 = vtanh.f32 %v1035_v36  ;;  %2661 = vmatprep.subr.bf16.mxu1 %v2926_v0 }
0x164a   :  { %v2793_v38 = vpop.eup %2792 }
0x164b   :  { %1038 = vrot.lane.b32.xlu0 %v2793_v38, %s2929_s3 }
0x16bd   :  { %v1039_v39 = vpop.permute.xlu0 %1038 }
0x16be   :  { %v1041_v40 = vmul.f32 %v2791_v26, %v1039_v39 }
0x16c0   :  { %1043 = vrot.lane.b32.xlu0 %v1041_v40, %s2930_s20 }
0x170d   :  { %v1377_v44 = vpop.f32.mrb[20].mxu1 }
0x170e   :  { %v1381_v27 = vadd.f32 %v1377_v44, %v1166_v42  ;;  %v2500_v48 = vpop.f32.mrb[21].mxu1  ;;  %v1181_v44 = vadd.f32 %v3237_v6, %v3201_v47 }
0x1710   :  { %2794 = vtanh.f32 %v1381_v27  ;;  %v2198_v51 = vmul.f32 -1.442695, %v1381_v27 }
0x1712   :  { %2796 = vpow2.f32 %v2198_v51 }
0x171a   :  { %v2795_v37 = vpop.eup %2794 }
0x171b   :  { %1391 = vrot.lane.b32.xlu1 %v2795_v37, %s2929_s3 }
0x171c   :  { %v2797_v52 = vpop.eup %2796 }
0x171d   :  { %v1385_v41 = vadd.f32 1.0, %v2797_v52 }
0x171f   :  { %2798 = vrcp.f32 %v1385_v41 }
0x1729   :  { %v2799_v53 = vpop.eup %2798 }
0x172a   :  { %v1389_v56 = vmul.f32 %v2799_v53, %v1296_v18 }
0x1732   :  { %v1044_v49 = vpop.permute.xlu0 %1043 }
0x1733   :  { %1046 = vst.msk [vmem:[#allocation4 + $0x38] sm:$0xff] %vm84_vm1, %v1044_v49 }
0x173a   :  { %v1063_v50 = vld [vmem:[#allocation4 + $0x38] sm:$0xff] }
0x173b   :  { %2477 = vmatmul.mubr.msk.f32.gmra.mrb[12].mxu0 %vm84_vm1, %v1063_v50 }
0x173c   :  { %2509 = vmatprep.mubr.msk.f32.mxu0 %vm2927_vm0, %v2928_v1 }
0x178d   :  { %v1392_v54 = vpop.permute.xlu1 %1391 }
0x178e   :  { %v1394_v55 = vmul.f32 %v2799_v53, %v1392_v54 }
0x1790   :  { %1396 = vrot.lane.b32.xlu1 %v1394_v55, %s2930_s20 }
0x1802   :  { %v1397_v57 = vpop.permute.xlu1 %1396 }
0x1803   :  { %v1399_v59 = vadd.f32 %v1397_v57, %v1389_v56 }
0x1805   :  { %2800 = vtanh.f32 %v1399_v59 }
0x180e   :  { %v3265_v60 = vpop.f32.mrb[12].mxu0 }
0x180f   :  { %v2801_v62 = vpop.eup %2800  ;;  %v3267_v63 = vpop.f32.mrb[13].mxu0 }
0x1810   :  { %1402 = vrot.lane.b32.xlu1 %v2801_v62, %s2929_s3 }
0x1882   :  { %v1403_v33 = vpop.permute.xlu1 %1402 }
0x1883   :  { %v3270_v2 = vmul.f32 %v2799_v53, %v1403_v33 }
0x1885   :  { %1413 = vrot.lane.b32.xlu1 %v3270_v2, %s2930_s20 }
0x18f7   :  { %v1414_v3 = vpop.permute.xlu1 %1413 }
0x18f8   :  { %2510 = vmatmul.mubr.msk.f32.vlgmr.msra.gmra.mrb[14].mxu0 %vm84_vm1, %v1414_v3  ;;  %v1186_v3 = vadd.f32 %v3199_v46, %v3237_v6 }
0x18f9   :  { %2657 = vmatpush3.bf16.msra.mxu0 %v3208_v58  ;;  %2531 = vmatprep.mubr.msk.f32.mxu0 %vm2927_vm0, %v2928_v1 }
0x18fa   :  { %2658 = vmatprep.subr.bf16.mxu0 %v2926_v0 }
0x18fd   :  { %2660 = vmatpush3.bf16.msra.mxu0 %v3212_v61 }
0x18fe   :  { %2667 = vmatprep.subr.bf16.mxu0 %v2926_v0 }
0x19cb   :  { %v1483_v5 = vpop.f32.mrb[14].mxu0 }
0x19cc   :  { %v1487_v7 = vadd.f32 %v1483_v5, %v1171_v4  ;;  %v2511_v8 = vpop.f32.mrb[15].mxu0 }
0x19ce   :  { %2802 = vtanh.f32 %v1487_v7  ;;  %v2200_v11 = vmul.f32 -1.442695, %v1487_v7 }
0x19d0   :  { %2804 = vpow2.f32 %v2200_v11 }
0x19d8   :  { %v2803_v9 = vpop.eup %2802 }
0x19d9   :  { %1497 = vrot.lane.b32.xlu0 %v2803_v9, %s2929_s3 }
0x19da   :  { %v2805_v10 = vpop.eup %2804 }
0x19db   :  { %v1491_v12 = vadd.f32 1.0, %v2805_v10 }
0x19dd   :  { %2806 = vrcp.f32 %v1491_v12 }
0x19e7   :  { %v2807_v13 = vpop.eup %2806 }
0x19e8   :  { %v1495_v14 = vmul.f32 %v2807_v13, %v1399_v59 }
0x1a4b   :  { %v1498_v15 = vpop.permute.xlu0 %1497 }
0x1a4c   :  { %v1500_v35 = vmul.f32 %v2807_v13, %v1498_v15 }
0x1a4e   :  { %1502 = vrot.lane.b32.xlu1 %v1500_v35, %s2930_s20 }
0x1ac0   :  { %v1503_v16 = vpop.permute.xlu1 %1502 }
0x1ac1   :  { %v1505_v45 = vadd.f32 %v1503_v16, %v1495_v14  ;;  %v1191_v16 = vadd.f32 %v3237_v6, %v3267_v63 }
0x1ac3   :  { %2808 = vtanh.f32 %v1505_v45 }
0x1acd   :  { %v2809_v17 = vpop.eup %2808 }
0x1ace   :  { %1508 = vrot.lane.b32.xlu0 %v2809_v17, %s2929_s3 }
0x1b40   :  { %v1509_v31 = vpop.permute.xlu0 %1508 }
0x1b41   :  { %v3286_v18 = vmul.f32 %v2807_v13, %v1509_v31 }
0x1b43   :  { %1519 = vrot.lane.b32.xlu1 %v3286_v18, %s2930_s20 }
0x1bb5   :  { %v1520_v19 = vpop.permute.xlu1 %1519 }
0x1bb6   :  { %2521 = vmatmul.mubr.msk.f32.vlgmr.msra.gmra.mrb[22].mxu1 %vm84_vm1, %v1520_v19 }
0x1bb7   :  { %2663 = vmatpush3.bf16.msra.mxu1 %v3208_v58  ;;  %2542 = vmatprep.mubr.msk.f32.mxu1 %vm2927_vm0, %v2928_v1 }
0x1bb8   :  { %2664 = vmatprep.subr.bf16.mxu1 %v2926_v0 }
0x1bbb   :  { %2666 = vmatpush3.bf16.msra.mxu1 %v3212_v61 }
0x1bbc   :  { %2673 = vmatprep.subr.bf16.mxu1 %v2926_v0 }
0x1c89   :  { %v1589_v21 = vpop.f32.mrb[22].mxu1 }
0x1c8a   :  { %v1593_v22 = vadd.f32 %v1589_v21, %v1176_v20  ;;  %v2522_v23 = vpop.f32.mrb[23].mxu1 }
0x1c8c   :  { %2810 = vtanh.f32 %v1593_v22  ;;  %v2202_v25 = vmul.f32 -1.442695, %v1593_v22 }
0x1c8e   :  { %2812 = vpow2.f32 %v2202_v25 }
0x1c96   :  { %v2811_v24 = vpop.eup %2810 }
0x1c97   :  { %1603 = vrot.lane.b32.xlu0 %v2811_v24, %s2929_s3 }
0x1c98   :  { %v2813_v26 = vpop.eup %2812 }
0x1c99   :  { %v1597_v28 = vadd.f32 1.0, %v2813_v26 }
0x1c9b   :  { %2814 = vrcp.f32 %v1597_v28 }
0x1ca5   :  { %v2815_v29 = vpop.eup %2814 }
0x1ca6   :  { %v1601_v34 = vmul.f32 %v2815_v29, %v1505_v45 }
0x1d09   :  { %v1604_v30 = vpop.permute.xlu0 %1603 }
0x1d0a   :  { %v1606_v32 = vmul.f32 %v2815_v29, %v1604_v30 }
0x1d0c   :  { %1608 = vrot.lane.b32.xlu1 %v1606_v32, %s2930_s20 }
0x1d7e   :  { %v1609_v36 = vpop.permute.xlu1 %1608 }
0x1d7f   :  { %v1611_v43 = vadd.f32 %v1609_v36, %v1601_v34  ;;  %v1196_v36 = vadd.f32 %v3265_v60, %v3237_v6 }
0x1d81   :  { %2816 = vtanh.f32 %v1611_v43 }
0x1d8b   :  { %v2817_v38 = vpop.eup %2816 }
0x1d8c   :  { %1614 = vrot.lane.b32.xlu0 %v2817_v38, %s2929_s3 }
0x1dfe   :  { %v1615_v39 = vpop.permute.xlu0 %1614 }
0x1dff   :  { %v3302_v40 = vmul.f32 %v2815_v29, %v1615_v39 }
0x1e01   :  { %1622 = vrot.lane.b32.xlu1 %v3302_v40, %s2930_s20 }
0x1e73   :  { %v1623_v42 = vpop.permute.xlu1 %1622 }
0x1e74   :  { %2532 = vmatmul.mubr.msk.f32.vlgmr.msra.gmra.mrb[16].mxu0 %vm84_vm1, %v1623_v42 }
0x1e75   :  { %2669 = vmatpush3.bf16.msra.mxu0 %v3208_v58  ;;  %2553 = vmatprep.mubr.msk.f32.mxu0 %vm2927_vm0, %v2928_v1 }
0x1e76   :  { %2670 = vmatprep.subr.bf16.mxu0 %v2926_v0 }
0x1e79   :  { %2672 = vmatpush3.bf16.msra.mxu0 %v3212_v61 }
0x1f47   :  { %v1692_v27 = vpop.f32.mrb[16].mxu0 }
0x1f48   :  { %v1696_v48 = vadd.f32 %v1692_v27, %v1181_v44  ;;  %v2533_v37 = vpop.f32.mrb[17].mxu0 }
0x1f4a   :  { %2818 = vtanh.f32 %v1696_v48  ;;  %v2204_v50 = vmul.f32 -1.442695, %v1696_v48 }
0x1f4c   :  { %2820 = vpow2.f32 %v2204_v50  ;;  %v2054_v50 = vld [vmem:[#allocation8 + $0x88] sm:$0xff] }
0x1f54   :  { %v2819_v49 = vpop.eup %2818 }
0x1f55   :  { %1706 = vrot.lane.b32.xlu0 %v2819_v49, %s2929_s3 }
0x1f56   :  { %v2821_v51 = vpop.eup %2820 }
0x1f57   :  { %v1700_v52 = vadd.f32 1.0, %v2821_v51  ;;  %v2037_v51 = vld [vmem:[#allocation8] sm:$0xff] }
0x1f59   :  { %2822 = vrcp.f32 %v1700_v52 }
0x1f63   :  { %v2823_v41 = vpop.eup %2822 }
0x1f64   :  { %v1704_v55 = vmul.f32 %v2823_v41, %v1611_v43 }
0x1fc7   :  { %v1707_v53 = vpop.permute.xlu0 %1706 }
0x1fc8   :  { %v1709_v54 = vmul.f32 %v2823_v41, %v1707_v53  ;;  %v2055_v53 = vld [vmem:[#allocation8 + $0x90] sm:$0xff] }
0x1fca   :  { %1711 = vrot.lane.b32.xlu1 %v1709_v54, %s2930_s20  ;;  %v2056_v54 = vld [vmem:[#allocation8 + $0x98] sm:$0xff] }
0x203c   :  { %v1712_v56 = vpop.permute.xlu1 %1711 }
0x203d   :  { %v1714_v47 = vadd.f32 %v1712_v56, %v1704_v55  ;;  %v2683_v56 = vpack.c.bf16 %v2056_v54, %v2055_v53 }
0x203f   :  { %2824 = vtanh.f32 %v1714_v47 }
0x2049   :  { %v2825_v57 = vpop.eup %2824 }
0x204a   :  { %1717 = vrot.lane.b32.xlu0 %v2825_v57, %s2929_s3  ;;  %v2040_v57 = vld [vmem:[#allocation8 + $0x18] sm:$0xff] }
0x20bc   :  { %v1718_v59 = vpop.permute.xlu0 %1717 }
0x20bd   :  { %v1720_v62 = vmul.f32 %v2823_v41, %v1718_v59  ;;  %v2038_v41 = vld [vmem:[#allocation8 + $0x8] sm:$0xff]  ;;  %v2057_v59 = vld [vmem:[#allocation8 + $0xa0] sm:$0xff] }
0x20be   :  { %v2681_v55 = vpack.c.bf16 %v2038_v41, %v2037_v51 }
0x20bf   :  { %1722 = vrot.lane.b32.xlu1 %v1720_v62, %s2930_s20  ;;  %v2058_v62 = vld [vmem:[#allocation8 + $0xa8] sm:$0xff] }
0x2131   :  { %v1723_v33 = vpop.permute.xlu1 %1722 }
0x2132   :  { %1725 = vst.msk [vmem:[#allocation3 + $0x8] sm:$0xff] %vm84_vm1, %v1723_v33  ;;  %2543 = vmatmul.mubr.msk.f32.vlgmr.msra.gmra.mrb[24].mxu1 %vm84_vm1, %v1723_v33 }
0x2133   :  { %2675 = vmatpush3.bf16.msra.mxu1 %v3208_v58  ;;  %2564 = vmatprep.mubr.msk.f32.mxu1 %vm2927_vm0, %v2928_v1 }
0x2134   :  { %2676 = vmatprep.subr.bf16.mxu1 %v2926_v0 }
0x2137   :  { %2678 = vmatpush3.bf16.msra.mxu1 %v3212_v61 }
0x2205   :  { %v1795_v4 = vpop.f32.mrb[24].mxu1 }
0x2206   :  { %v1799_v5 = vadd.f32 %v1795_v4, %v1186_v3  ;;  %v2544_v7 = vpop.f32.mrb[25].mxu1  ;;  %v2687_v4 = vpack.c.bf16 %v2058_v62, %v2057_v59 }
0x2207   :  { %v2042_v7 = vld [vmem:[#allocation8 + $0x28] sm:$0xff] }
0x2208   :  { %2826 = vtanh.f32 %v1799_v5  ;;  %v2206_v9 = vmul.f32 -1.442695, %v1799_v5  ;;  %v2041_v5 = vld [vmem:[#allocation8 + $0x20] sm:$0xff] }
0x220a   :  { %2828 = vpow2.f32 %v2206_v9  ;;  %v2060_v9 = vld [vmem:[#allocation8 + $0xb8] sm:$0xff] }
0x2212   :  { %v2827_v8 = vpop.eup %2826 }
0x2213   :  { %1809 = vrot.lane.b32.xlu0 %v2827_v8, %s2929_s3  ;;  %v2059_v8 = vld [vmem:[#allocation8 + $0xb0] sm:$0xff] }
0x2214   :  { %v2829_v58 = vpop.eup %2828 }
0x2215   :  { %v1803_v11 = vadd.f32 1.0, %v2829_v58  ;;  %v2689_v58 = vpack.c.bf16 %v2042_v7, %v2041_v5 }
0x2217   :  { %2830 = vrcp.f32 %v1803_v11  ;;  %v2691_v11 = vpack.c.bf16 %v2060_v9, %v2059_v8 }
0x2221   :  { %v2831_v1 = vpop.eup %2830 }
0x2222   :  { %v1807_v61 = vmul.f32 %v2831_v1, %v1714_v47  ;;  %v2039_v47 = vld [vmem:[#allocation8 + $0x10] sm:$0xff] }
0x2223   :  { %v2685_v33 = vpack.c.bf16 %v2040_v57, %v2039_v47 }
0x2285   :  { %v1810_v10 = vpop.permute.xlu0 %1809 }
0x2286   :  { %v1812_v0 = vmul.f32 %v2831_v1, %v1810_v10  ;;  %v2044_v10 = vld [vmem:[#allocation8 + $0x38] sm:$0xff] }
0x2288   :  { %1814 = vrot.lane.b32.xlu1 %v1812_v0, %s2930_s20  ;;  %v2061_v0 = vld [vmem:[#allocation8 + $0xc0] sm:$0xff] }
0x22fa   :  { %v1815_v12 = vpop.permute.xlu1 %1814 }
0x22fb   :  { %v1817_v46 = vadd.f32 %v1815_v12, %v1807_v61  ;;  %v2062_v61 = vld [vmem:[#allocation8 + $0xc8] sm:$0xff] }
0x22fd   :  { %2832 = vtanh.f32 %v1817_v46 }
0x2307   :  { %v2833_v13 = vpop.eup %2832 }
0x2308   :  { %1820 = vrot.lane.b32.xlu0 %v2833_v13, %s2929_s3  ;;  %v2045_v13 = vld [vmem:[#allocation8 + $0x40] sm:$0xff] }
0x237a   :  { %v1821_v15 = vpop.permute.xlu0 %1820 }
0x237b   :  { %v1823_v35 = vmul.f32 %v2831_v1, %v1821_v15  ;;  %v2043_v1 = vld [vmem:[#allocation8 + $0x30] sm:$0xff]  ;;  %v2046_v15 = vld [vmem:[#allocation8 + $0x48] sm:$0xff] }
0x237c   :  { %v2693_v12 = vpack.c.bf16 %v2044_v10, %v2043_v1 }
0x237d   :  { %1830 = vrot.lane.b32.xlu1 %v1823_v35, %s2930_s20 }
0x23ef   :  { %v1831_v14 = vpop.permute.xlu1 %1830 }
0x23f0   :  { %2554 = vmatmul.mubr.msk.f32.vlgmr.msra.gmra.mrb[18].mxu0 %vm84_vm1, %v1831_v14 }
0x24c3   :  { %v1900_v45 = vpop.f32.mrb[18].mxu0 }
0x24c4   :  { %v1904_v17 = vadd.f32 %v1900_v45, %v1191_v16  ;;  %v2555_v31 = vpop.f32.mrb[19].mxu0  ;;  %v2063_v16 = vld [vmem:[#allocation8 + $0xd0] sm:$0xff]  ;;  %v2064_v45 = vld [vmem:[#allocation8 + $0xd8] sm:$0xff] }
0x24c5   :  { %v2699_v31 = vpack.c.bf16 %v2064_v45, %v2063_v16 }
0x24c6   :  { %2834 = vtanh.f32 %v1904_v17  ;;  %v2208_v20 = vmul.f32 -1.442695, %v1904_v17 }
0x24c8   :  { %2836 = vpow2.f32 %v2208_v20  ;;  %v2048_v20 = vld [vmem:[#allocation8 + $0x58] sm:$0xff] }
0x24d0   :  { %v2835_v19 = vpop.eup %2834 }
0x24d1   :  { %1914 = vrot.lane.b32.xlu0 %v2835_v19, %s2929_s3  ;;  %v2047_v19 = vld [vmem:[#allocation8 + $0x50] sm:$0xff] }
0x24d2   :  { %v2837_v21 = vpop.eup %2836 }
0x24d3   :  { %v1908_v22 = vadd.f32 1.0, %v2837_v21  ;;  %v2701_v21 = vpack.c.bf16 %v2048_v20, %v2047_v19 }
0x24d5   :  { %2838 = vrcp.f32 %v1908_v22  ;;  %v2065_v22 = vld [vmem:[#allocation8 + $0xe0] sm:$0xff] }
0x24df   :  { %v2839_v23 = vpop.eup %2838 }
0x24e0   :  { %v1912_v26 = vmul.f32 %v2839_v23, %v1817_v46  ;;  %v2695_v46 = vpack.c.bf16 %v2062_v61, %v2061_v0 }
0x2543   :  { %v1915_v24 = vpop.permute.xlu0 %1914 }
0x2544   :  { %v1917_v25 = vmul.f32 %v2839_v23, %v1915_v24 }
0x2546   :  { %1919 = vrot.lane.b32.xlu1 %v1917_v25, %s2930_s20  ;;  %v2049_v25 = vld [vmem:[#allocation8 + $0x60] sm:$0xff] }
0x25b8   :  { %v1920_v28 = vpop.permute.xlu1 %1919 }
0x25b9   :  { %v3336_v63 = vadd.f32 %v1920_v28, %v1912_v26  ;;  %v2050_v26 = vld [vmem:[#allocation8 + $0x68] sm:$0xff] }
0x25ba   :  { %v2705_v28 = vpack.c.bf16 %v2050_v26, %v2049_v25 }
0x25bb   :  { %2840 = vtanh.f32 %v3336_v63 }
0x25c5   :  { %v2841_v29 = vpop.eup %2840 }
0x25c6   :  { %1925 = vrot.lane.b32.xlu0 %v2841_v29, %s2929_s3  ;;  %v2067_v29 = vld [vmem:[#allocation8 + $0xf0] sm:$0xff] }
0x2638   :  { %v1926_v30 = vpop.permute.xlu0 %1925 }
0x2639   :  { %v3340_v32 = vmul.f32 %v2839_v23, %v1926_v30  ;;  %v2066_v23 = vld [vmem:[#allocation8 + $0xe8] sm:$0xff]  ;;  %v2068_v30 = vld [vmem:[#allocation8 + $0xf8] sm:$0xff] }
0x263a   :  { %v2703_v24 = vpack.c.bf16 %v2066_v23, %v2065_v22 }
0x263b   :  { %1935 = vrot.lane.b32.xlu1 %v3340_v32, %s2930_s20 }
0x26ad   :  { %v1936_v34 = vpop.permute.xlu1 %1935 }
0x26ae   :  { %2565 = vmatmul.mubr.msk.f32.vlgmr.msra.gmra.mrb[26].mxu1 %vm84_vm1, %v1936_v34  ;;  %v2707_v34 = vpack.c.bf16 %v2068_v30, %v2067_v29 }
0x2781   :  { %v2005_v43 = vpop.f32.mrb[26].mxu1 }
0x2782   :  { %v2009_v38 = vadd.f32 %v2005_v43, %v1196_v36  ;;  %v2566_v39 = vpop.f32.mrb[27].mxu1  ;;  %v2052_v36 = vld [vmem:[#allocation8 + $0x78] sm:$0xff] }
0x2784   :  { %2842 = vtanh.f32 %v2009_v38  ;;  %v2210_v44 = vmul.f32 -1.442695, %v2009_v38 }
0x2786   :  { %2844 = vpow2.f32 %v2210_v44 }
0x278e   :  { %v2843_v42 = vpop.eup %2842 }
0x278f   :  { %2019 = vrot.lane.b32.xlu0 %v2843_v42, %s2929_s3 }
0x2790   :  { %v2845_v27 = vpop.eup %2844 }
0x2791   :  { %v2013_v6 = vadd.f32 1.0, %v2845_v27 }
0x2793   :  { %1825 = vrot.lane.b32.xlu0 %v1823_v35, %s2929_s3  ;;  %2846 = vrcp.f32 %v2013_v6  ;;  %v2697_v35 = vpack.c.bf16 %v2046_v15, %v2045_v13 }
0x2797   :  { %1407 = vrot.lane.b32.xlu0 %v3270_v2, %s2929_s3  ;;  %v2053_v2 = vld [vmem:[#allocation8 + $0x80] sm:$0xff] }
0x279b   :  { %1513 = vrot.lane.b32.xlu0 %v3286_v18, %s2931_s6  ;;  %v2679_v18 = vpack.c.bf16 %v2054_v50, %v2053_v2 }
0x279d   :  { %v3353_v60 = vpop.eup %2846  ;;  %2680 = vmatprep.subr.bf16.mxu0 %v2679_v18 }
0x279e   :  { %2682 = vmatpush3.bf16.msra.mxu0 %v2681_v55 }
0x279f   :  { %2684 = vmatprep.subr.bf16.mxu0 %v2683_v56 }
0x27a2   :  { %2686 = vmatpush3.bf16.msra.mxu0 %v2685_v33 }
0x27a3   :  { %2688 = vmatprep.subr.bf16.mxu0 %v2687_v4 }
0x27a6   :  { %2690 = vmatpush3.bf16.msra.mxu0 %v2689_v58 }
0x27a7   :  { %2692 = vmatprep.subr.bf16.mxu0 %v2691_v11 }
0x27aa   :  { %2694 = vmatpush3.bf16.msra.mxu0 %v2693_v12 }
0x27ab   :  { %2696 = vmatprep.subr.bf16.mxu0 %v2695_v46 }
0x27ae   :  { %2698 = vmatpush3.bf16.msra.mxu0 %v2697_v35 }
0x27af   :  { %2700 = vmatprep.subr.bf16.mxu0 %v2699_v31 }
0x27b2   :  { %2702 = vmatpush3.bf16.msra.mxu0 %v2701_v21 }
0x27b3   :  { %2704 = vmatprep.subr.bf16.mxu0 %v2703_v24 }
0x27b6   :  { %2706 = vmatpush3.bf16.msra.mxu0 %v2705_v28 }
0x27b7   :  { %2708 = vmatprep.subr.bf16.mxu0 %v2707_v34 }
0x2801   :  { %v2020_v48 = vpop.permute.xlu0 %2019 }
0x2802   :  { %v2022_v37 = vmul.f32 %v3353_v60, %v2020_v48 }
0x2804   :  { %2024 = vrot.lane.b32.xlu1 %v2022_v37, %s2930_s20  ;;  %v2211_v37 = vld [vmem:[%s3391_s8] ss:$0 sm:$0xff] }
0x2805   :  { %v1826_v49 = vpop.permute.xlu0 %1825 }
0x2806   :  { %1828 = vst.msk [vmem:[#allocation3 + $0x8] sm:$0xff] %vm1410_vm2, %v1826_v49 }
0x2809   :  { %v1408_v52 = vpop.permute.xlu0 %1407 }
0x280a   :  { %1411 = vst.msk [vmem:[#allocation3] sm:$0xff] %vm1410_vm2, %v1408_v52 }
0x280d   :  { %v1514_v3 = vpop.permute.xlu0 %1513 }
0x280e   :  { %1517 = vst.msk [vmem:[#allocation3] sm:$0xff] %vm1516_vm3, %v1514_v3 }
0x280f   :  { %1619 = vst.msk [vmem:[#allocation3] sm:$0xff] %vm1618_vm4, %v3302_v40  ;;  %v2017_v40 = vmul.f32 %v3353_v60, %v3336_v63  ;;  %v2051_v63 = vld [vmem:[#allocation8 + $0x70] sm:$0xff] }
0x2810   :  { %v2709_v43 = vpack.c.bf16 %v2052_v36, %v2051_v63 }
0x2812   :  { %2710 = vmatpush3.bf16.msra.mxu0 %v2709_v43 }
0x2816   :  { %v2035_v6 = vld [vmem:[#allocation3] sm:$0xff] }
0x2876   :  { %v2025_v14 = vpop.permute.xlu1 %2024 }
0x2877   :  { %v2027_v17 = vadd.f32 %v2025_v14, %v2017_v40 }
0x2879   :  { %2848 = vtanh.f32 %v2027_v17 }
0x2883   :  { %v2849_v38 = vpop.eup %2848 }
0x2884   :  { %2030 = vrot.lane.b32.xlu1 %v2849_v38, %s2929_s3 }
0x2888   :  { %1930 = vrot.lane.b32.xlu1 %v3340_v32, %s2931_s6 }
0x28f6   :  { %v2031_v39 = vpop.permute.xlu1 %2030 }
0x28f7   :  { %v2033_v42 = vmul.f32 %v3353_v60, %v2031_v39 }
0x28fa   :  { %v1931_v44 = vpop.permute.xlu1 %1930 }
0x28fb   :  { %1933 = vst.msk [vmem:[#allocation3 + $0x8] sm:$0xff] %vm1516_vm3, %v1931_v44 }
0x28fc   :  { %2034 = vst.msk [vmem:[#allocation3 + $0x8] sm:$0xff] %vm1618_vm4, %v2033_v42 }
0x2903   :  { %v2036_v27 = vld [vmem:[#allocation3 + $0x8] sm:$0xff] }
0x2904   :  { %2140 = vmatprep.mubr.f32.mxu0 %v2036_v27 }
0x2905   :  { %2141 = vmatmul.mubr.f32.vlgmr.msra.gmra.mrb[20].mxu0 %v2035_v6 }
0x29d8   :  { %v2348_v48 = vpop.f32.mrb[20].mxu0 }
0x29d9   :  { %v2349_v49 = vpop.f32.mrb[21].mxu0 }
0x29da   :  { %v2350_v32 = vadd.f32 %v2349_v49, %v2348_v48 }
0x29dc   :  { %v2143_v2 = vadd.f32 %v2350_v32, %v2211_v37 }
0x29de   :  { %2146 = vst [vmem:[#allocation10] sm:$0xff] %v2143_v2 }
0x29df   :  { %2905 = shalt.err (!%p2902_p6)
}
0x29e0   :  { %s2906_s13 = scalar_lea.hbm %s3392_s9, 128 }
0x29e1   :  { %p2907_p7 = scmp.ne.s32.totalorder %s3392_s9, %s2906_s13  ;;  %p2910_p8 = scmp.lt.u32.totalorder %s2906_s13, %s3392_s9 }
0x29e3   :  { %p2912_p9 = pnand %p2910_p8, %p2907_p7 }
0x29e5   :  { %2915 = shalt.err (!%p2912_p9)
}
0x29e6   :  { %2156 = dma.vmem_to_hbm [thread:$0]  %s2154_s12, 128, %s3392_s9, [#allocation7]  }
0x29e7   :  { %2920 = dma.done.wait [#allocation7], 128  }
0x29e8   :  { %2921 = vsyncadd [#allocation7], 4294967168 }
0x29e9   :  { %2160 = vsyncpa [#allocation6], 1 }
0x29ea   :  { %2161 = vsyncpa [#allocation9], 1 }
0x29eb   :  { %2162 = vsyncpa [#allocation7], 1 }

</bundles_post_ra>
